<compile_context>
chip_gen: v7x
topology: tpu7x:2x2x1
jax: 0.10.0
libtpu: 0.0.40
codegen_flags: <defaults>
</compile_context>

<pallas_src>
import jax
import jax.numpy as jnp
from jax import lax
from jax.experimental import pallas as pl
from jax.experimental.pallas import tpu as pltpu


_DN_XWT = (((1,), (1,)), ((), ()))  # contract x dim 1 with W dim 1  (x @ W.T)


def qnet_kernel(state_ref, action_ref, w1_ref, b1_ref, w2_ref, b2_ref,
                w3_ref, b3_ref, out_ref):
    # x: [Bt, in_dim] — elementwise sum, batch-major.
    x = state_ref[...] + action_ref[...]

    # fc1 + relu: [Bt, in] x [hidden, in] -> [Bt, hidden]  (MXU, transposed contraction)
    h1 = lax.dot_general(x, w1_ref[...], _DN_XWT,
                         preferred_element_type=jnp.float32) + b1_ref[...]
    h1 = jnp.maximum(h1, 0.0)

    # fc2 + relu: [Bt, hidden] x [hidden, hidden] -> [Bt, hidden]
    h2 = lax.dot_general(h1, w2_ref[...], _DN_XWT,
                         preferred_element_type=jnp.float32) + b2_ref[...]
    h2 = jnp.maximum(h2, 0.0)

    # fc3 on the VPU/XLU: broadcast-mul by w3 [1, hidden] and reduce lanes.
    out = jnp.sum(h2 * w3_ref[...], axis=1, keepdims=True) + b3_ref[0, 0]
    out_ref[...] = out


def twin_qnet_kernel(state_ref, action_ref, w1_ref, b1_ref, w2_ref, b2_ref,
                     w3_ref, b3_ref, out_ref):
    # Fused twin critics: read state/action once, 2-iteration head loop.
    x = state_ref[...] + action_ref[...]
    qs = []
    for h in range(2):
        h1 = lax.dot_general(x, w1_ref[h], _DN_XWT,
                             preferred_element_type=jnp.float32) + b1_ref[h]
        h1 = jnp.maximum(h1, 0.0)
        h2 = lax.dot_general(h1, w2_ref[h], _DN_XWT,
                             preferred_element_type=jnp.float32) + b2_ref[h]
        h2 = jnp.maximum(h2, 0.0)
        qs.append(jnp.sum(h2 * w3_ref[h], axis=1, keepdims=True) + b3_ref[h])
    out_ref[...] = jnp.concatenate(qs, axis=1)


def _resident(shape):
    # Constant block index -> stays VMEM-resident across all grid steps.
    return pl.BlockSpec(shape, lambda i, _s=shape: tuple(0 for _ in _s))


def _batch_tiling(B, block_b):
    # Single full-batch step unless B is huge and tiles evenly.
    if B > block_b and B % block_b == 0:
        return block_b, B // block_b
    return B, 1


def qnet_forward(state, action, params, *, block_b=4096):
    """state, action: [B, state_dim + action_dim] f32 -> [B, 1] f32."""
    w1, b1, w2, b2, w3, b3 = params
    B, in_dim = state.shape
    hidden = w1.shape[0]
    bb, nb = _batch_tiling(B, block_b)

    flops = 2 * B * (in_dim * hidden + hidden * hidden + hidden)
    bytes_accessed = 4 * (2 * B * in_dim
                          + hidden * in_dim + hidden
                          + hidden * hidden + hidden
                          + hidden + 1 + B)

    return pl.pallas_call(
        qnet_kernel,
        out_shape=jax.ShapeDtypeStruct((B, 1), jnp.float32),
        grid=(nb,),
        in_specs=[
            pl.BlockSpec((bb, in_dim), lambda i: (i, 0)),   # state
            pl.BlockSpec((bb, in_dim), lambda i: (i, 0)),   # action
            _resident(w1.shape), _resident(b1.shape),
            _resident(w2.shape), _resident(b2.shape),
            _resident(w3.shape),
            pl.BlockSpec(memory_space=pltpu.MemorySpace.SMEM),   # b3 scalar
        ],
        out_specs=pl.BlockSpec((bb, 1), lambda i: (i, 0)),
        compiler_params=pltpu.CompilerParams(
            dimension_semantics=("parallel",)),
        cost_estimate=pl.CostEstimate(
            flops=flops, transcendentals=0, bytes_accessed=bytes_accessed),
    )(state, action, w1, b1, w2, b2, w3, b3)


def twin_qnet_forward(state, action, twin_params, *, block_b=4096):
    """Fused Q1/Q2 forward: one pallas_call, one read of state/action.

    twin_params are the stacked parameters from pack_twin_params().
    Returns (q1, q2), each [B, 1].
    """
    w1, b1, w2, b2, w3, b3 = twin_params
    B, in_dim = state.shape
    hidden = w1.shape[1]
    bb, nb = _batch_tiling(B, block_b)

    flops = 2 * 2 * B * (in_dim * hidden + hidden * hidden + hidden)
    bytes_accessed = 4 * (2 * B * in_dim
                          + 2 * (hidden * in_dim + hidden
                                 + hidden * hidden + hidden + hidden + 1)
                          + 2 * B)

    out = pl.pallas_call(
        twin_qnet_kernel,
        out_shape=jax.ShapeDtypeStruct((B, 2), jnp.float32),
        grid=(nb,),
        in_specs=[
            pl.BlockSpec((bb, in_dim), lambda i: (i, 0)),   # state
            pl.BlockSpec((bb, in_dim), lambda i: (i, 0)),   # action
            _resident(w1.shape), _resident(b1.shape),
            _resident(w2.shape), _resident(b2.shape),
            _resident(w3.shape),
            pl.BlockSpec(memory_space=pltpu.MemorySpace.SMEM),   # b3 [2]
        ],
        out_specs=pl.BlockSpec((bb, 2), lambda i: (i, 0)),
        compiler_params=pltpu.CompilerParams(
            dimension_semantics=("parallel",)),
        cost_estimate=pl.CostEstimate(
            flops=flops, transcendentals=0, bytes_accessed=bytes_accessed),
    )(state, action, w1, b1, w2, b2, w3, b3)
    return out[:, 0:1], out[:, 1:2]


def init_params(key, state_dim, action_dim, hidden_dim):
    """Shapes follow the PyTorch module (nn.Linear weight layout [out, in]);
    biases zero as in weight_init_."""
    in_dim = state_dim + action_dim

    def kaiming_uniform(k, fan_out, fan_in):
        bound = jnp.sqrt(6.0 / fan_in)
        return jax.random.uniform(k, (fan_out, fan_in), jnp.float32, -bound, bound)

    k1, k2, k3 = jax.random.split(key, 3)
    w1 = kaiming_uniform(k1, hidden_dim, in_dim)       # [hidden, in_dim]
    b1 = jnp.zeros((1, hidden_dim), jnp.float32)       # row bias (batch-major)
    w2 = kaiming_uniform(k2, hidden_dim, hidden_dim)   # [hidden, hidden]
    b2 = jnp.zeros((1, hidden_dim), jnp.float32)
    w3 = kaiming_uniform(k3, 1, hidden_dim)            # [1, hidden]
    b3 = jnp.zeros((1, 1), jnp.float32)                # scalar, lives in SMEM
    return (w1, b1, w2, b2, w3, b3)


def pack_twin_params(params_a, params_b):
    """Stack two critics' parameters along a leading axis of 2."""
    w1a, b1a, w2a, b2a, w3a, b3a = params_a
    w1b, b1b, w2b, b2b, w3b, b3b = params_b
    return (jnp.stack([w1a, w1b]),                       # [2, H, in]
            jnp.stack([b1a, b1b]),                       # [2, 1, H]
            jnp.stack([w2a, w2b]),                       # [2, H, H]
            jnp.stack([b2a, b2b]),                       # [2, 1, H]
            jnp.stack([w3a, w3b]),                       # [2, 1, H]
            jnp.concatenate([b3a.reshape(-1), b3b.reshape(-1)]))  # [2] (SMEM)


def _ref_forward(params, x):
    w1, b1, w2, b2, w3, b3 = params
    h = jnp.maximum(x @ w1.T + b1, 0.0)
    h = jnp.maximum(h @ w2.T + b2, 0.0)
    return h @ w3.T + b3


if __name__ == "__main__":
    key = jax.random.PRNGKey(0)
    k_state, k_action, k_p1, k_p2 = jax.random.split(key, 4)

    state_dim, action_dim, hidden_dim = 6, 2, 32
    batch = 512
    in_dim = state_dim + action_dim

    # The PyTorch forward adds the two inputs elementwise, so both must have
    # last dim == state_dim + action_dim.
    state = jax.random.normal(k_state, (batch, in_dim), jnp.float32)
    action = jax.random.normal(k_action, (batch, in_dim), jnp.float32)

    params = init_params(k_p1, state_dim, action_dim, hidden_dim)

    # Single-critic forward (matches the PyTorch module).
    out = qnet_forward(state, action, params)
    out = jax.block_until_ready(out)

    x = state + action
    ref = _ref_forward(params, x)
    assert out.shape == (batch, 1)
    assert jnp.allclose(out, ref, atol=1e-4, rtol=1e-4)

    # Fused twin-critic forward (one pallas_call for Q1 and Q2).
    params2 = init_params(k_p2, state_dim, action_dim, hidden_dim)
    twin = pack_twin_params(params, params2)
    q1, q2 = twin_qnet_forward(state, action, twin)
    q1, q2 = jax.block_until_ready((q1, q2))
    ref2 = _ref_forward(params2, x)
    assert q1.shape == (batch, 1) and q2.shape == (batch, 1)
    assert jnp.allclose(q1, ref, atol=1e-4, rtol=1e-4)
    assert jnp.allclose(q2, ref2, atol=1e-4, rtol=1e-4)

    print("KERNEL_OK")
</pallas_src>

<mosaic_0001>
module attributes {stable_mosaic.version = 11 : i64} {
  func.func @qnet_kernel(%arg0: i32, %arg1: memref<512x8xf32, #tpu.memory_space<vmem>>, %arg2: memref<512x8xf32, #tpu.memory_space<vmem>>, %arg3: memref<32x8xf32, #tpu.memory_space<vmem>>, %arg4: memref<1x32xf32, #tpu.memory_space<vmem>>, %arg5: memref<32x32xf32, #tpu.memory_space<vmem>>, %arg6: memref<1x32xf32, #tpu.memory_space<vmem>>, %arg7: memref<1x32xf32, #tpu.memory_space<vmem>>, %arg8: memref<1x1xf32, #tpu.memory_space<smem>>, %arg9: memref<512x1xf32, #tpu.memory_space<vmem>>) attributes {dimension_semantics = [#tpu.dimension_semantics<parallel>], iteration_bounds = array<i64: 1>, scalar_prefetch = 0 : i64, scratch_operands = 0 : i64, tpu.core_type = #tpu.core_type<tc>, window_params = [{transform_indices = @transform_0, window_bounds = array<i64: 512, 8>}, {transform_indices = @transform_1, window_bounds = array<i64: 512, 8>}, {pipeline_mode = #tpu.pipeline_mode<synchronous>, transform_indices = @transform_2, window_bounds = array<i64: 32, 8>}, {pipeline_mode = #tpu.pipeline_mode<synchronous>, transform_indices = @transform_3, window_bounds = array<i64: 1, 32>}, {pipeline_mode = #tpu.pipeline_mode<synchronous>, transform_indices = @transform_4, window_bounds = array<i64: 32, 32>}, {pipeline_mode = #tpu.pipeline_mode<synchronous>, transform_indices = @transform_5, window_bounds = array<i64: 1, 32>}, {pipeline_mode = #tpu.pipeline_mode<synchronous>, transform_indices = @transform_6, window_bounds = array<i64: 1, 32>}, {transform_indices = @transform_7, window_bounds = array<i64: 1, 1>}, {transform_indices = @transform_8, window_bounds = array<i64: 512, 1>}]} {
    %c0 = arith.constant 0 : index
    %c0_0 = arith.constant 0 : index
    %0 = vector.load %arg1[%c0, %c0_0] : memref<512x8xf32, #tpu.memory_space<vmem>>, vector<512x8xf32>
    %c0_1 = arith.constant 0 : index
    %c0_2 = arith.constant 0 : index
    %1 = vector.load %arg2[%c0_1, %c0_2] : memref<512x8xf32, #tpu.memory_space<vmem>>, vector<512x8xf32>
    %2 = arith.addf %0, %1 : vector<512x8xf32>
    %c0_3 = arith.constant 0 : index
    %c0_4 = arith.constant 0 : index
    %3 = vector.load %arg3[%c0_3, %c0_4] : memref<32x8xf32, #tpu.memory_space<vmem>>, vector<32x8xf32>
    %cst = arith.constant dense<0.000000e+00> : vector<512x32xf32>
    %4 = tpu.matmul %2, %3, %cst {dimension_numbers = #tpu.dot_dimension_numbers<[1], [1], [0], [0], [0, 0, 1, 0], [], []>} : vector<512x8xf32>, vector<32x8xf32>, vector<512x32xf32> -> vector<512x32xf32>
    %c0_5 = arith.constant 0 : index
    %c0_6 = arith.constant 0 : index
    %5 = vector.load %arg4[%c0_5, %c0_6] : memref<1x32xf32, #tpu.memory_space<vmem>>, vector<1x32xf32>
    %6 = vector.broadcast %5 : vector<1x32xf32> to vector<512x32xf32>
    %7 = arith.addf %4, %6 : vector<512x32xf32>
    %cst_7 = arith.constant 0.000000e+00 : f32
    %8 = vector.broadcast %cst_7 : f32 to vector<512x32xf32>
    %9 = arith.maximumf %7, %8 : vector<512x32xf32>
    %c0_8 = arith.constant 0 : index
    %c0_9 = arith.constant 0 : index
    %10 = vector.load %arg5[%c0_8, %c0_9] : memref<32x32xf32, #tpu.memory_space<vmem>>, vector<32x32xf32>
    %cst_10 = arith.constant dense<0.000000e+00> : vector<512x32xf32>
    %11 = tpu.matmul %9, %10, %cst_10 {dimension_numbers = #tpu.dot_dimension_numbers<[1], [1], [0], [0], [0, 0, 1, 0], [], []>} : vector<512x32xf32>, vector<32x32xf32>, vector<512x32xf32> -> vector<512x32xf32>
    %c0_11 = arith.constant 0 : index
    %c0_12 = arith.constant 0 : index
    %12 = vector.load %arg6[%c0_11, %c0_12] : memref<1x32xf32, #tpu.memory_space<vmem>>, vector<1x32xf32>
    %13 = vector.broadcast %12 : vector<1x32xf32> to vector<512x32xf32>
    %14 = arith.addf %11, %13 : vector<512x32xf32>
    %cst_13 = arith.constant 0.000000e+00 : f32
    %15 = vector.broadcast %cst_13 : f32 to vector<512x32xf32>
    %16 = arith.maximumf %14, %15 : vector<512x32xf32>
    %c0_14 = arith.constant 0 : index
    %c0_15 = arith.constant 0 : index
    %17 = vector.load %arg7[%c0_14, %c0_15] : memref<1x32xf32, #tpu.memory_space<vmem>>, vector<1x32xf32>
    %18 = vector.broadcast %17 : vector<1x32xf32> to vector<512x32xf32>
    %19 = arith.mulf %16, %18 : vector<512x32xf32>
    %cst_16 = arith.constant dense<0.000000e+00> : vector<512xf32>
    %20 = vector.multi_reduction <add>, %19, %cst_16 [1] : vector<512x32xf32> to vector<512xf32>
    %21 = vector.shape_cast %20 : vector<512xf32> to vector<512x1xf32>
    %c0_17 = arith.constant 0 : index
    %c0_18 = arith.constant 0 : index
    %22 = memref.load %arg8[%c0_17, %c0_18] : memref<1x1xf32, #tpu.memory_space<smem>>
    %23 = vector.broadcast %22 : f32 to vector<512x1xf32>
    %24 = arith.addf %21, %23 : vector<512x1xf32>
    %c0_19 = arith.constant 0 : index
    %c0_20 = arith.constant 0 : index
    %25 = vector.load %arg9[%c0_19, %c0_20] : memref<512x1xf32, #tpu.memory_space<vmem>>, vector<512x1xf32>
    tpu.vector_store %arg9[%c0_19, %c0_20], %24 {strides = array<i32>} : memref<512x1xf32, #tpu.memory_space<vmem>>, vector<512x1xf32>,
    return
  }
  func.func @transform_0(%arg0: i32) -> (i32, i32) {
    %c0_i32 = arith.constant 0 : i32
    %c0_i32_0 = arith.constant 0 : i32
    return %arg0, %c0_i32 : i32, i32
  }
  func.func @transform_1(%arg0: i32) -> (i32, i32) {
    %c0_i32 = arith.constant 0 : i32
    %c0_i32_0 = arith.constant 0 : i32
    return %arg0, %c0_i32 : i32, i32
  }
  func.func @transform_2(%arg0: i32) -> (i32, i32) {
    %c0_i32 = arith.constant 0 : i32
    %c0_i32_0 = arith.constant 0 : i32
    %c0_i32_1 = arith.constant 0 : i32
    return %c0_i32, %c0_i32_0 : i32, i32
  }
  func.func @transform_3(%arg0: i32) -> (i32, i32) {
    %c0_i32 = arith.constant 0 : i32
    %c0_i32_0 = arith.constant 0 : i32
    %c0_i32_1 = arith.constant 0 : i32
    return %c0_i32, %c0_i32_0 : i32, i32
  }
  func.func @transform_4(%arg0: i32) -> (i32, i32) {
    %c0_i32 = arith.constant 0 : i32
    %c0_i32_0 = arith.constant 0 : i32
    %c0_i32_1 = arith.constant 0 : i32
    return %c0_i32, %c0_i32_0 : i32, i32
  }
  func.func @transform_5(%arg0: i32) -> (i32, i32) {
    %c0_i32 = arith.constant 0 : i32
    %c0_i32_0 = arith.constant 0 : i32
    %c0_i32_1 = arith.constant 0 : i32
    return %c0_i32, %c0_i32_0 : i32, i32
  }
  func.func @transform_6(%arg0: i32) -> (i32, i32) {
    %c0_i32 = arith.constant 0 : i32
    %c0_i32_0 = arith.constant 0 : i32
    %c0_i32_1 = arith.constant 0 : i32
    return %c0_i32, %c0_i32_0 : i32, i32
  }
  func.func @transform_7(%arg0: i32) -> (i32, i32) {
    %c0_i32 = arith.constant 0 : i32
    %c0_i32_0 = arith.constant 0 : i32
    %c0_i32_1 = arith.constant 0 : i32
    return %c0_i32, %c0_i32_0 : i32, i32
  }
  func.func @transform_8(%arg0: i32) -> (i32, i32) {
    %c0_i32 = arith.constant 0 : i32
    %c0_i32_0 = arith.constant 0 : i32
    return %arg0, %c0_i32 : i32, i32
  }
}

</mosaic_0001>

<bundles_post_ra>
// kernel: tpu_custom_call.1
= control target key start
LH: loop header
LB: loop body
LE: loop exit
PB: predicated region body
PF: predicated region fallthrough
CT: control target
= control target key end

     0   :  { %vm233_vm0 = vcmask 64512   ;;  %vm898_vm2 = vcmask 261120   ;;  %vm1881_vm4 = vcmask 7168   ;;  %s3761_s2 = inlined_call_operand.vmem [shape: f32[32,8], index: 2, kind: input, shape index: {}]   ;;  %s3762_s0 = inlined_call_operand.vmem [shape: f32[512,8], index: 0, kind: input, shape index: {}]   ;;  %s3763_s1 = inlined_call_operand.vmem [shape: f32[512,8], index: 1, kind: input, shape index: {}]   ;;  %s3764_s4 = inlined_call_operand.vmem [shape: f32[32,32], index: 4, kind: input, shape index: {}]   ;;  %s3765_s3 = inlined_call_operand.vmem [shape: f32[1,32], index: 3, kind: input, shape index: {}]   ;;  %s3766_s5 = inlined_call_operand.vmem [shape: f32[1,32], index: 5, kind: input, shape index: {}]   ;;  %s3767_s6 = inlined_call_operand.vmem [shape: f32[1,32], index: 6, kind: input, shape index: {}]   ;;  %s3768_s7 = inlined_call_operand.<no memory space> [shape: f32[1,1], index: 7, kind: input, shape index: {}]   ;;  %s3769_s8 = inlined_call_operand.vmem [shape: f32[512,1], index: 8, kind: output, shape index: {}]  }
   0x1   :  { %v222_v0 = vld [vmem:[%s3761_s2] sm:$0xff]  ;;  %v223_v1 = vld [vmem:[%s3761_s2 + $0x8] sm:$0xff]  ;;  %vm2434_vm1 = vmpackc.low %vm233_vm0, %vm233_vm0 }
   0x2   :  { %v2433_v2 = vpack.c.bf16 %v223_v1, %v222_v0  ;;  %v224_v3 = vld [vmem:[%s3761_s2 + $0x10] sm:$0xff]  ;;  %v225_v4 = vld [vmem:[%s3761_s2 + $0x18] sm:$0xff]  ;;  %v30_v5 = vld [vmem:[%s3762_s0] sm:$0xff] }
   0x3   :  { %v2439_v6 = vpack.c.bf16 %v225_v4, %v224_v3  ;;  %v94_v7 = vld [vmem:[%s3763_s1] sm:$0xff]  ;;  %v31_v9 = vld [vmem:[%s3762_s0 + $0x8] sm:$0xff]  ;;  %v32_v11 = vld [vmem:[%s3762_s0 + $0x10] sm:$0xff] }
   0x4   :  { %2435 = vmatprep.subr.msk.bf16.mxu0 %vm2434_vm1, %v2433_v2  ;;  %v158_v8 = vadd.f32 %v94_v7, %v30_v5  ;;  %v95_v10 = vld [vmem:[%s3763_s1 + $0x8] sm:$0xff]  ;;  %v96_v12 = vld [vmem:[%s3763_s1 + $0x10] sm:$0xff]  ;;  %v33_v15 = vld [vmem:[%s3762_s0 + $0x18] sm:$0xff] }
   0x5   :  { %2438 = vmatpush3.bf16.xpose.msk.msra.mxu0 %vm2434_vm1, %v2433_v2  ;;  %v159_v13 = vadd.f32 %v95_v10, %v31_v9  ;;  %v160_v14 = vadd.f32 %v96_v12, %v32_v11  ;;  %v97_v16 = vld [vmem:[%s3763_s1 + $0x18] sm:$0xff]  ;;  %v34_v17 = vld [vmem:[%s3762_s0 + $0x20] sm:$0xff]  ;;  %v35_v19 = vld [vmem:[%s3762_s0 + $0x28] sm:$0xff] }
   0x6   :  { %2441 = vmatprep.subr.msk.bf16.mxu0 %vm2434_vm1, %v2439_v6  ;;  %2233 = vmatprep.mubr.msk.f32.mxu0 %vm233_vm0, %v158_v8  ;;  %v98_v18 = vld [vmem:[%s3763_s1 + $0x20] sm:$0xff]  ;;  %v99_v20 = vld [vmem:[%s3763_s1 + $0x28] sm:$0xff]  ;;  %v161_v21 = vadd.f32 %v97_v16, %v33_v15  ;;  %v36_v22 = vld [vmem:[%s3762_s0 + $0x30] sm:$0xff] }
   0x7   :  { %v100_v23 = vld [vmem:[%s3763_s1 + $0x30] sm:$0xff]  ;;  %v57_v24 = vld [vmem:[%s3762_s0 + $0xd8] sm:$0xff]  ;;  %v162_v25 = vadd.f32 %v98_v18, %v34_v17  ;;  %v58_v27 = vld [vmem:[%s3762_s0 + $0xe0] sm:$0xff]  ;;  %v163_v40 = vadd.f32 %v99_v20, %v35_v19 }
   0x8   :  { %v121_v26 = vld [vmem:[%s3763_s1 + $0xd8] sm:$0xff]  ;;  %v122_v28 = vld [vmem:[%s3763_s1 + $0xe0] sm:$0xff]  ;;  %v59_v31 = vld [vmem:[%s3762_s0 + $0xe8] sm:$0xff]  ;;  %v164_v48 = vadd.f32 %v100_v23, %v36_v22 }
   0x9   :  { %v2573_v29 = vadd.f32 %v121_v26, %v57_v24  ;;  %v2575_v30 = vadd.f32 %v122_v28, %v58_v27  ;;  %v123_v32 = vld [vmem:[%s3763_s1 + $0xe8] sm:$0xff]  ;;  %v60_v33 = vld [vmem:[%s3762_s0 + $0xf0] sm:$0xff]  ;;  %v37_v34 = vld [vmem:[%s3762_s0 + $0x38] sm:$0xff] }
   0xa   :  { %v101_v35 = vld [vmem:[%s3763_s1 + $0x38] sm:$0xff]  ;;  %v2592_v36 = vadd.f32 %v123_v32, %v59_v31  ;;  %v124_v37 = vld [vmem:[%s3763_s1 + $0xf0] sm:$0xff]  ;;  %v38_v41 = vld [vmem:[%s3762_s0 + $0x40] sm:$0xff] }
   0xb   :  { %v61_v38 = vld [vmem:[%s3762_s0 + $0xf8] sm:$0xff]  ;;  %v102_v42 = vld [vmem:[%s3763_s1 + $0x40] sm:$0xff]  ;;  %v2610_v43 = vadd.f32 %v124_v37, %v60_v33  ;;  %v63_v47 = vld [vmem:[%s3762_s0 + $0x108] sm:$0xff]  ;;  %v165_v0 = vadd.f32 %v101_v35, %v37_v34 }
   0xc   :  { %v125_v39 = vld [vmem:[%s3763_s1 + $0xf8] sm:$0xff]  ;;  %v62_v45 = vld [vmem:[%s3762_s0 + $0x100] sm:$0xff]  ;;  %v127_v50 = vld [vmem:[%s3763_s1 + $0x108] sm:$0xff]  ;;  %v166_v8 = vadd.f32 %v102_v42, %v38_v41 }
   0xd   :  { %2444 = vmatpush3.bf16.xpose.msk.msra.mxu0 %vm2434_vm1, %v2439_v6  ;;  %v2612_v44 = vadd.f32 %v125_v39, %v61_v38  ;;  %v126_v46 = vld [vmem:[%s3763_s1 + $0x100] sm:$0xff]  ;;  %v64_v51 = vld [vmem:[%s3762_s0 + $0x110] sm:$0xff]  ;;  %v2635_v53 = vadd.f32 %v127_v50, %v63_v47  ;;  %v65_v55 = vld [vmem:[%s3762_s0 + $0x118] sm:$0xff] }
   0xe   :  { %v2624_v49 = vadd.f32 %v126_v46, %v62_v45  ;;  %v128_v52 = vld [vmem:[%s3763_s1 + $0x110] sm:$0xff]  ;;  %v129_v56 = vld [vmem:[%s3763_s1 + $0x118] sm:$0xff]  ;;  %v66_v57 = vld [vmem:[%s3762_s0 + $0x120] sm:$0xff] }
   0xf   :  { %v2637_v54 = vadd.f32 %v128_v52, %v64_v51  ;;  %v39_v58 = vld [vmem:[%s3762_s0 + $0x48] sm:$0xff]  ;;  %v2654_v60 = vadd.f32 %v129_v56, %v65_v55  ;;  %v130_v61 = vld [vmem:[%s3763_s1 + $0x120] sm:$0xff]  ;;  %v40_v1 = vld [vmem:[%s3762_s0 + $0x50] sm:$0xff] }
  0x10   :  { %v103_v59 = vld [vmem:[%s3763_s1 + $0x48] sm:$0xff]  ;;  %v104_v2 = vld [vmem:[%s3763_s1 + $0x50] sm:$0xff]  ;;  %v2672_v3 = vadd.f32 %v130_v61, %v66_v57  ;;  %v69_v7 = vld [vmem:[%s3762_s0 + $0x138] sm:$0xff] }
  0x11   :  { %v67_v62 = vld [vmem:[%s3762_s0 + $0x128] sm:$0xff]  ;;  %v68_v5 = vld [vmem:[%s3762_s0 + $0x130] sm:$0xff]  ;;  %v133_v10 = vld [vmem:[%s3763_s1 + $0x138] sm:$0xff]  ;;  %v167_v24 = vadd.f32 %v103_v59, %v39_v58  ;;  %v168_v34 = vadd.f32 %v104_v2, %v40_v1 }
  0x12   :  { %v131_v63 = vld [vmem:[%s3763_s1 + $0x128] sm:$0xff]  ;;  %v132_v6 = vld [vmem:[%s3763_s1 + $0x130] sm:$0xff]  ;;  %v70_v11 = vld [vmem:[%s3762_s0 + $0x140] sm:$0xff] }
  0x13   :  { %v2674_v4 = vadd.f32 %v131_v63, %v67_v62  ;;  %v2686_v9 = vadd.f32 %v132_v6, %v68_v5  ;;  %v134_v12 = vld [vmem:[%s3763_s1 + $0x140] sm:$0xff]  ;;  %v71_v15 = vld [vmem:[%s3762_s0 + $0x148] sm:$0xff]  ;;  %v72_v17 = vld [vmem:[%s3762_s0 + $0x150] sm:$0xff] }
  0x14   :  { %2234 = vmatmul.mubr.msk.f32.vlgmr.msra.gmra.mrb[0].mxu0 %vm233_vm0, %v159_v13  ;;  %v2697_v13 = vadd.f32 %v133_v10, %v69_v7  ;;  %v135_v16 = vld [vmem:[%s3763_s1 + $0x148] sm:$0xff]  ;;  %v41_v18 = vld [vmem:[%s3762_s0 + $0x58] sm:$0xff]  ;;  %v106_v26 = vld [vmem:[%s3763_s1 + $0x60] sm:$0xff] }
  0x15   :  { %2236 = vmatprep.mubr.msk.f32.mxu0 %vm233_vm0, %v160_v14  ;;  %v2699_v14 = vadd.f32 %v134_v12, %v70_v11  ;;  %v105_v19 = vld [vmem:[%s3763_s1 + $0x58] sm:$0xff]  ;;  %v2716_v20 = vadd.f32 %v135_v16, %v71_v15  ;;  %v74_v31 = vld [vmem:[%s3762_s0 + $0x160] sm:$0xff]  ;;  %v75_v33 = vld [vmem:[%s3762_s0 + $0x168] sm:$0xff] }
  0x16   :  { %v73_v22 = vld [vmem:[%s3762_s0 + $0x158] sm:$0xff]  ;;  %v138_v32 = vld [vmem:[%s3763_s1 + $0x160] sm:$0xff]  ;;  %v139_v37 = vld [vmem:[%s3763_s1 + $0x168] sm:$0xff]  ;;  %v169_v56 = vadd.f32 %v105_v19, %v41_v18 }
  0x17   :  { %v137_v23 = vld [vmem:[%s3763_s1 + $0x158] sm:$0xff]  ;;  %v2748_v35 = vadd.f32 %v138_v32, %v74_v31  ;;  %v76_v38 = vld [vmem:[%s3762_s0 + $0x170] sm:$0xff]  ;;  %v78_v46 = vld [vmem:[%s3762_s0 + $0x180] sm:$0xff] }
  0x18   :  { %2237 = vmatmul.mubr.msk.f32.gmra.mrb[2].mxu0 %vm233_vm0, %v161_v21  ;;  %v136_v21 = vld [vmem:[%s3763_s1 + $0x150] sm:$0xff]  ;;  %v2736_v28 = vadd.f32 %v137_v23, %v73_v22  ;;  %v77_v42 = vld [vmem:[%s3762_s0 + $0x178] sm:$0xff]  ;;  %v43_v47 = vld [vmem:[%s3762_s0 + $0x68] sm:$0xff] }
  0x19   :  { %2239 = vmatprep.mubr.msk.f32.mxu0 %vm233_vm0, %v162_v25  ;;  %v42_v25 = vld [vmem:[%s3762_s0 + $0x60] sm:$0xff]  ;;  %v2734_v27 = vadd.f32 %v136_v21, %v72_v17  ;;  %v140_v39 = vld [vmem:[%s3763_s1 + $0x170] sm:$0xff]  ;;  %v141_v45 = vld [vmem:[%s3763_s1 + $0x178] sm:$0xff] }
  0x1a   :  { %v2761_v41 = vadd.f32 %v140_v39, %v76_v38  ;;  %v2778_v50 = vadd.f32 %v141_v45, %v77_v42  ;;  %v142_v51 = vld [vmem:[%s3763_s1 + $0x180] sm:$0xff]  ;;  %v79_v52 = vld [vmem:[%s3762_s0 + $0x188] sm:$0xff]  ;;  %v44_v57 = vld [vmem:[%s3762_s0 + $0x70] sm:$0xff]  ;;  %v170_v1 = vadd.f32 %v106_v26, %v42_v25 }
  0x1b   :  { %v143_v55 = vld [vmem:[%s3763_s1 + $0x188] sm:$0xff]  ;;  %v108_v58 = vld [vmem:[%s3763_s1 + $0x70] sm:$0xff]  ;;  %v2796_v59 = vadd.f32 %v142_v51, %v78_v46  ;;  %v145_v5 = vld [vmem:[%s3763_s1 + $0x198] sm:$0xff] }
  0x1c   :  { %2240 = vmatmul.mubr.msk.f32.gmra.mrb[4].mxu0 %vm233_vm0, %v163_v40  ;;  %v2759_v40 = vadd.f32 %v139_v37, %v75_v33  ;;  %v2798_v61 = vadd.f32 %v143_v55, %v79_v52  ;;  %v80_v62 = vld [vmem:[%s3762_s0 + $0x190] sm:$0xff]  ;;  %v82_v6 = vld [vmem:[%s3762_s0 + $0x1a0] sm:$0xff]  ;;  %v83_v11 = vld [vmem:[%s3762_s0 + $0x1a8] sm:$0xff]  ;;  %v172_v37 = vadd.f32 %v108_v58, %v44_v57 }
  0x1d   :  { %2242 = vmatprep.mubr.msk.f32.mxu0 %vm233_vm0, %v164_v48  ;;  %v107_v48 = vld [vmem:[%s3763_s1 + $0x68] sm:$0xff]  ;;  %v144_v63 = vld [vmem:[%s3763_s1 + $0x190] sm:$0xff]  ;;  %v146_v7 = vld [vmem:[%s3763_s1 + $0x1a0] sm:$0xff] }
  0x1e   :  { %v2810_v2 = vadd.f32 %v144_v63, %v80_v62  ;;  %v2823_v10 = vadd.f32 %v146_v7, %v82_v6  ;;  %v147_v12 = vld [vmem:[%s3763_s1 + $0x1a8] sm:$0xff]  ;;  %v84_v15 = vld [vmem:[%s3762_s0 + $0x1b0] sm:$0xff]  ;;  %v45_v16 = vld [vmem:[%s3762_s0 + $0x78] sm:$0xff]  ;;  %v171_v23 = vadd.f32 %v107_v48, %v43_v47 }
  0x1f   :  { %v109_v17 = vld [vmem:[%s3763_s1 + $0x78] sm:$0xff]  ;;  %v2840_v18 = vadd.f32 %v147_v12, %v83_v11  ;;  %v148_v19 = vld [vmem:[%s3763_s1 + $0x1b0] sm:$0xff]  ;;  %v110_v25 = vld [vmem:[%s3763_s1 + $0x80] sm:$0xff] }
  0x20   :  { %2243 = vmatmul.mubr.msk.f32.gmra.mrb[6].mxu0 %vm233_vm0, %v165_v0  ;;  %v81_v0 = vld [vmem:[%s3762_s0 + $0x198] sm:$0xff]  ;;  %v2858_v26 = vadd.f32 %v148_v19, %v84_v15  ;;  %v86_v32 = vld [vmem:[%s3762_s0 + $0x1c0] sm:$0xff]  ;;  %v151_v39 = vld [vmem:[%s3763_s1 + $0x1c8] sm:$0xff] }
  0x21   :  { %2245 = vmatprep.mubr.msk.f32.mxu0 %vm233_vm0, %v166_v8  ;;  %v2821_v8 = vadd.f32 %v145_v5, %v81_v0  ;;  %v85_v21 = vld [vmem:[%s3762_s0 + $0x1b8] sm:$0xff]  ;;  %v150_v33 = vld [vmem:[%s3763_s1 + $0x1c0] sm:$0xff]  ;;  %v88_v42 = vld [vmem:[%s3762_s0 + $0x1d0] sm:$0xff]  ;;  %v173_v0 = vadd.f32 %v109_v17, %v45_v16 }
  0x22   :  { %v149_v22 = vld [vmem:[%s3763_s1 + $0x1b8] sm:$0xff]  ;;  %v2872_v38 = vadd.f32 %v150_v33, %v86_v32  ;;  %v152_v45 = vld [vmem:[%s3763_s1 + $0x1d0] sm:$0xff]  ;;  %v90_v52 = vld [vmem:[%s3762_s0 + $0x1e0] sm:$0xff] }
  0x23   :  { %v2860_v31 = vadd.f32 %v149_v22, %v85_v21  ;;  %v2885_v47 = vadd.f32 %v152_v45, %v88_v42  ;;  %v89_v48 = vld [vmem:[%s3762_s0 + $0x1d8] sm:$0xff]  ;;  %v47_v55 = vld [vmem:[%s3762_s0 + $0x88] sm:$0xff]  ;;  %v154_v58 = vld [vmem:[%s3763_s1 + $0x1e0] sm:$0xff] }
  0x24   :  { %2246 = vmatmul.mubr.msk.f32.gmra.mrb[8].mxu0 %vm233_vm0, %v167_v24  ;;  %v46_v24 = vld [vmem:[%s3762_s0 + $0x80] sm:$0xff]  ;;  %v153_v51 = vld [vmem:[%s3763_s1 + $0x1d8] sm:$0xff]  ;;  %v91_v62 = vld [vmem:[%s3762_s0 + $0x1e8] sm:$0xff]  ;;  %v2920_v6 = vadd.f32 %v154_v58, %v90_v52 }
  0x25   :  { %2248 = vmatprep.mubr.msk.f32.mxu0 %vm233_vm0, %v168_v34  ;;  %v87_v34 = vld [vmem:[%s3762_s0 + $0x1c8] sm:$0xff]  ;;  %v2902_v57 = vadd.f32 %v153_v51, %v89_v48  ;;  %v112_v5 = vld [vmem:[%s3763_s1 + $0x90] sm:$0xff]  ;;  %v93_v15 = vld [vmem:[%s3762_s0 + $0x1f8] sm:$0xff]  ;;  %v174_v16 = vadd.f32 %v110_v25, %v46_v24 }
  0x26   :  { %v2883_v46 = vadd.f32 %v151_v39, %v87_v34  ;;  %v155_v63 = vld [vmem:[%s3763_s1 + $0x1e8] sm:$0xff]  ;;  %v92_v11 = vld [vmem:[%s3762_s0 + $0x1f0] sm:$0xff]  ;;  %v157_v19 = vld [vmem:[%s3763_s1 + $0x1f8] sm:$0xff] }
  0x27   :  { %v2922_v7 = vadd.f32 %v155_v63, %v91_v62  ;;  %v156_v12 = vld [vmem:[%s3763_s1 + $0x1f0] sm:$0xff]  ;;  %v887_v21 = vld [vmem:[%s3764_s4] sm:$0xff]  ;;  %v888_v22 = vld [vmem:[%s3764_s4 + $0x8] sm:$0xff] }
  0x28   :  { %2249 = vmatmul.mubr.msk.f32.gmra.mrb[10].mxu0 %vm233_vm0, %v169_v56  ;;  %v111_v56 = vld [vmem:[%s3763_s1 + $0x88] sm:$0xff]  ;;  %v2934_v17 = vadd.f32 %v156_v12, %v92_v11  ;;  %v2445_v32 = vpack.c.bf16 %v888_v22, %v887_v21  ;;  %vm2949_vm3 = vmpackc.low %vm898_vm2, %vm898_vm2  ;;  %v889_v25 = vld [vmem:[%s3764_s4 + $0x10] sm:$0xff] }
  0x29   :  { %2251 = vmatprep.mubr.msk.f32.mxu0 %vm233_vm0, %v170_v1  ;;  %v48_v1 = vld [vmem:[%s3762_s0 + $0x90] sm:$0xff]  ;;  %v890_v33 = vld [vmem:[%s3764_s4 + $0x18] sm:$0xff]  ;;  %v50_v48 = vld [vmem:[%s3762_s0 + $0xa0] sm:$0xff] }
  0x2a   :  { %v2451_v34 = vpack.c.bf16 %v890_v33, %v889_v25  ;;  %2447 = vmatprep.subr.msk.bf16.mxu1 %vm2949_vm3, %v2445_v32  ;;  %v176_v39 = vadd.f32 %v112_v5, %v48_v1  ;;  %v49_v42 = vld [vmem:[%s3762_s0 + $0x98] sm:$0xff]  ;;  %v114_v51 = vld [vmem:[%s3763_s1 + $0xa0] sm:$0xff]  ;;  %v115_v58 = vld [vmem:[%s3763_s1 + $0xa8] sm:$0xff] }
  0x2b   :  { %v113_v45 = vld [vmem:[%s3763_s1 + $0x98] sm:$0xff]  ;;  %2450 = vmatpush3.bf16.xpose.msk.msra.mxu1 %vm2949_vm3, %v2445_v32  ;;  %v52_v62 = vld [vmem:[%s3762_s0 + $0xb0] sm:$0xff]  ;;  %v54_v12 = vld [vmem:[%s3762_s0 + $0xc0] sm:$0xff] }
  0x2c   :  { %2252 = vmatmul.mubr.msk.f32.gmra.mrb[12].mxu0 %vm233_vm0, %v171_v23  ;;  %v2945_v23 = vadd.f32 %v157_v19, %v93_v15  ;;  %2453 = vmatprep.subr.msk.bf16.mxu1 %vm2949_vm3, %v2451_v34  ;;  %v177_v52 = vadd.f32 %v113_v45, %v49_v42  ;;  %v116_v63 = vld [vmem:[%s3763_s1 + $0xb0] sm:$0xff]  ;;  %v53_v5 = vld [vmem:[%s3762_s0 + $0xb8] sm:$0xff]  ;;  %v118_v15 = vld [vmem:[%s3763_s1 + $0xc0] sm:$0xff] }
  0x2d   :  { %2254 = vmatprep.mubr.msk.f32.mxu0 %vm233_vm0, %v172_v37  ;;  %v175_v37 = vadd.f32 %v111_v56, %v47_v55  ;;  %v178_v55 = vadd.f32 %v114_v51, %v50_v48  ;;  %v51_v56 = vld [vmem:[%s3762_s0 + $0xa8] sm:$0xff]  ;;  %v180_v1 = vadd.f32 %v116_v63, %v52_v62  ;;  %v117_v11 = vld [vmem:[%s3763_s1 + $0xb8] sm:$0xff]  ;;  %v182_v19 = vadd.f32 %v118_v15, %v54_v12  ;;  %v56_v32 = vld [vmem:[%s3762_s0 + $0xd0] sm:$0xff] }
  0x2e   :  { %v55_v21 = vld [vmem:[%s3762_s0 + $0xc8] sm:$0xff]  ;;  %v120_v24 = vld [vmem:[%s3763_s1 + $0xd0] sm:$0xff] }
  0x2f   :  { %v119_v22 = vld [vmem:[%s3763_s1 + $0xc8] sm:$0xff]  ;;  %v184_v33 = vadd.f32 %v120_v24, %v56_v32 }
  0x30   :  { %2255 = vmatmul.mubr.msk.f32.gmra.mrb[14].mxu0 %vm233_vm0, %v173_v0  ;;  %v179_v0 = vadd.f32 %v115_v58, %v51_v56  ;;  %v183_v25 = vadd.f32 %v119_v22, %v55_v21 }
  0x31   :  { %2257 = vmatprep.mubr.msk.f32.mxu0 %vm233_vm0, %v174_v16  ;;  %v181_v16 = vadd.f32 %v117_v11, %v53_v5 }
  0x33   :  { %2456 = vmatpush3.bf16.xpose.msk.msra.mxu1 %vm2949_vm3, %v2451_v34 }
  0x34   :  { %2258 = vmatmul.mubr.msk.f32.gmra.mrb[16].mxu0 %vm233_vm0, %v175_v37 }
  0x35   :  { %2260 = vmatprep.mubr.msk.f32.mxu0 %vm233_vm0, %v176_v39 }
  0x38   :  { %2261 = vmatmul.mubr.msk.f32.gmra.mrb[18].mxu0 %vm233_vm0, %v177_v52 }
  0x39   :  { %2263 = vmatprep.mubr.msk.f32.mxu0 %vm233_vm0, %v178_v55 }
  0x3c   :  { %2264 = vmatmul.mubr.msk.f32.gmra.mrb[20].mxu0 %vm233_vm0, %v179_v0 }
  0x3d   :  { %2266 = vmatprep.mubr.msk.f32.mxu0 %vm233_vm0, %v180_v1 }
  0x40   :  { %2267 = vmatmul.mubr.msk.f32.gmra.mrb[22].mxu0 %vm233_vm0, %v181_v16 }
  0x41   :  { %2269 = vmatprep.mubr.msk.f32.mxu0 %vm233_vm0, %v182_v19 }
  0x44   :  { %2270 = vmatmul.mubr.msk.f32.gmra.mrb[24].mxu0 %vm233_vm0, %v183_v25 }
  0x45   :  { %2272 = vmatprep.mubr.msk.f32.mxu0 %vm233_vm0, %v184_v33 }
  0x48   :  { %2273 = vmatmul.mubr.msk.f32.gmra.mrb[26].mxu0 %vm233_vm0, %v2573_v29  ;;  %v3104_v29 = vld [vmem:[%s3765_s3] ss:$0 sm:$0xff] }
  0x49   :  { %2275 = vmatprep.mubr.msk.f32.mxu0 %vm233_vm0, %v2575_v30 }
  0x4c   :  { %2276 = vmatmul.mubr.msk.f32.gmra.mrb[28].mxu0 %vm233_vm0, %v2592_v36 }
  0x4d   :  { %2278 = vmatprep.mubr.msk.f32.mxu0 %vm233_vm0, %v2610_v43 }
  0x50   :  { %2279 = vmatmul.mubr.msk.f32.gmra.mrb[30].mxu0 %vm233_vm0, %v2612_v44 }
  0x51   :  { %2281 = vmatprep.mubr.msk.f32.mxu0 %vm233_vm0, %v2624_v49 }
  0x54   :  { %2282 = vmatmul.mubr.msk.f32.gmra.mrb[32].mxu0 %vm233_vm0, %v2635_v53 }
  0x55   :  { %2284 = vmatprep.mubr.msk.f32.mxu0 %vm233_vm0, %v2637_v54 }
  0x58   :  { %2285 = vmatmul.mubr.msk.f32.gmra.mrb[34].mxu0 %vm233_vm0, %v2654_v60 }
  0x59   :  { %2287 = vmatprep.mubr.msk.f32.mxu0 %vm233_vm0, %v2672_v3 }
  0x5c   :  { %2288 = vmatmul.mubr.msk.f32.gmra.mrb[36].mxu0 %vm233_vm0, %v2674_v4 }
  0x5d   :  { %2290 = vmatprep.mubr.msk.f32.mxu0 %vm233_vm0, %v2686_v9 }
  0x60   :  { %2291 = vmatmul.mubr.msk.f32.gmra.mrb[38].mxu0 %vm233_vm0, %v2697_v13 }
  0x61   :  { %2293 = vmatprep.mubr.msk.f32.mxu0 %vm233_vm0, %v2699_v14 }
  0x64   :  { %2294 = vmatmul.mubr.msk.f32.gmra.mrb[40].mxu0 %vm233_vm0, %v2716_v20 }
  0x65   :  { %2296 = vmatprep.mubr.msk.f32.mxu0 %vm233_vm0, %v2734_v27 }
  0x68   :  { %2297 = vmatmul.mubr.msk.f32.gmra.mrb[42].mxu0 %vm233_vm0, %v2736_v28 }
  0x69   :  { %2299 = vmatprep.mubr.msk.f32.mxu0 %vm233_vm0, %v2748_v35 }
  0x6c   :  { %2300 = vmatmul.mubr.msk.f32.gmra.mrb[44].mxu0 %vm233_vm0, %v2759_v40 }
  0x6d   :  { %2302 = vmatprep.mubr.msk.f32.mxu0 %vm233_vm0, %v2761_v41 }
  0x70   :  { %2303 = vmatmul.mubr.msk.f32.gmra.mrb[46].mxu0 %vm233_vm0, %v2778_v50 }
  0x71   :  { %2305 = vmatprep.mubr.msk.f32.mxu0 %vm233_vm0, %v2796_v59 }
  0x74   :  { %2306 = vmatmul.mubr.msk.f32.gmra.mrb[48].mxu0 %vm233_vm0, %v2798_v61 }
  0x75   :  { %2308 = vmatprep.mubr.msk.f32.mxu0 %vm233_vm0, %v2810_v2 }
  0x78   :  { %2309 = vmatmul.mubr.msk.f32.gmra.mrb[50].mxu0 %vm233_vm0, %v2821_v8 }
  0x79   :  { %2311 = vmatprep.mubr.msk.f32.mxu0 %vm233_vm0, %v2823_v10 }
  0x7c   :  { %2312 = vmatmul.mubr.msk.f32.gmra.mrb[52].mxu0 %vm233_vm0, %v2840_v18 }
  0x7d   :  { %2314 = vmatprep.mubr.msk.f32.mxu0 %vm233_vm0, %v2858_v26 }
  0x80   :  { %2315 = vmatmul.mubr.msk.f32.gmra.mrb[54].mxu0 %vm233_vm0, %v2860_v31 }
  0x81   :  { %2317 = vmatprep.mubr.msk.f32.mxu0 %vm233_vm0, %v2872_v38 }
  0x84   :  { %2318 = vmatmul.mubr.msk.f32.gmra.mrb[56].mxu0 %vm233_vm0, %v2883_v46 }
  0x85   :  { %2320 = vmatprep.mubr.msk.f32.mxu0 %vm233_vm0, %v2885_v47 }
  0x88   :  { %2321 = vmatmul.mubr.msk.f32.gmra.mrb[58].mxu0 %vm233_vm0, %v2902_v57 }
  0x89   :  { %2323 = vmatprep.mubr.msk.f32.mxu0 %vm233_vm0, %v2920_v6 }
  0x8c   :  { %2324 = vmatmul.mubr.msk.f32.gmra.mrb[60].mxu0 %vm233_vm0, %v2922_v7 }
  0x8d   :  { %2326 = vmatprep.mubr.msk.f32.mxu0 %vm233_vm0, %v2934_v17 }
  0x90   :  { %2327 = vmatmul.mubr.msk.f32.gmra.mrb[62].mxu0 %vm233_vm0, %v2945_v23 }
  0xe7   :  { %v2235_v30 = vpop.f32.mrb[0].mxu0 }
  0xe8   :  { %v510_v36 = vadd.f32 %v2235_v30, %v3104_v29  ;;  %v504_v43 = vpop.f32.mrb[1].mxu0 }
  0xe9   :  { %v505_v44 = vadd.f32 %v3104_v29, %v504_v43 }
  0xea   :  { %v824_v54 = vmax.f32 %v510_v36, 0.0 }
  0xeb   :  { %v823_v49 = vmax.f32 %v505_v44, 0.0  ;;  %v2238_v53 = vpop.f32.mrb[2].mxu0 }
  0xec   :  { %v520_v60 = vadd.f32 %v2238_v53, %v3104_v29  ;;  %v514_v3 = vpop.f32.mrb[3].mxu0 }
  0xed   :  { %v515_v4 = vadd.f32 %v3104_v29, %v514_v3  ;;  %2337 = vmatprep.mubr.msk.f32.mxu1 %vm898_vm2, %v823_v49 }
  0xee   :  { %2338 = vmatmul.mubr.msk.f32.vlgmr.msra.gmra.mrb[0].mxu1 %vm898_vm2, %v824_v54  ;;  %v826_v14 = vmax.f32 %v520_v60, 0.0 }
  0xef   :  { %v825_v9 = vmax.f32 %v515_v4, 0.0  ;;  %v2241_v13 = vpop.f32.mrb[4].mxu0 }
  0xf0   :  { %v530_v20 = vadd.f32 %v2241_v13, %v3104_v29  ;;  %v524_v27 = vpop.f32.mrb[5].mxu0 }
  0xf1   :  { %v525_v28 = vadd.f32 %v3104_v29, %v524_v27  ;;  %2340 = vmatprep.mubr.msk.f32.mxu1 %vm898_vm2, %v825_v9 }
  0xf2   :  { %v828_v35 = vmax.f32 %v530_v20, 0.0  ;;  %2341 = vmatmul.mubr.msk.f32.gmra.mrb[2].mxu1 %vm898_vm2, %v826_v14 }
  0xf3   :  { %v827_v40 = vmax.f32 %v525_v28, 0.0  ;;  %v2244_v41 = vpop.f32.mrb[6].mxu0 }
  0xf4   :  { %v540_v50 = vadd.f32 %v2244_v41, %v3104_v29  ;;  %v534_v59 = vpop.f32.mrb[7].mxu0 }
  0xf5   :  { %v535_v61 = vadd.f32 %v3104_v29, %v534_v59  ;;  %2343 = vmatprep.mubr.msk.f32.mxu1 %vm898_vm2, %v827_v40 }
  0xf6   :  { %v830_v2 = vmax.f32 %v540_v50, 0.0  ;;  %2344 = vmatmul.mubr.msk.f32.gmra.mrb[4].mxu1 %vm898_vm2, %v828_v35 }
  0xf7   :  { %v829_v8 = vmax.f32 %v535_v61, 0.0  ;;  %v2247_v10 = vpop.f32.mrb[8].mxu0 }
  0xf8   :  { %v550_v18 = vadd.f32 %v2247_v10, %v3104_v29  ;;  %v544_v26 = vpop.f32.mrb[9].mxu0 }
  0xf9   :  { %v545_v31 = vadd.f32 %v3104_v29, %v544_v26  ;;  %2346 = vmatprep.mubr.msk.f32.mxu1 %vm898_vm2, %v829_v8 }
  0xfa   :  { %v832_v38 = vmax.f32 %v550_v18, 0.0  ;;  %2347 = vmatmul.mubr.msk.f32.gmra.mrb[6].mxu1 %vm898_vm2, %v830_v2 }
  0xfb   :  { %v831_v46 = vmax.f32 %v545_v31, 0.0  ;;  %v2250_v47 = vpop.f32.mrb[10].mxu0 }
  0xfc   :  { %v560_v57 = vadd.f32 %v2250_v47, %v3104_v29  ;;  %v554_v6 = vpop.f32.mrb[11].mxu0 }
  0xfd   :  { %v555_v7 = vadd.f32 %v3104_v29, %v554_v6  ;;  %2349 = vmatprep.mubr.msk.f32.mxu1 %vm898_vm2, %v831_v46 }
  0xfe   :  { %v834_v17 = vmax.f32 %v560_v57, 0.0  ;;  %2350 = vmatmul.mubr.msk.f32.gmra.mrb[8].mxu1 %vm898_vm2, %v832_v38 }
  0xff   :  { %v833_v23 = vmax.f32 %v555_v7, 0.0  ;;  %v2253_v34 = vpop.f32.mrb[12].mxu0 }
 0x100   :  { %v570_v37 = vadd.f32 %v2253_v34, %v3104_v29  ;;  %v564_v39 = vpop.f32.mrb[13].mxu0 }
 0x101   :  { %v565_v42 = vadd.f32 %v3104_v29, %v564_v39  ;;  %2352 = vmatprep.mubr.msk.f32.mxu1 %vm898_vm2, %v833_v23 }
 0x102   :  { %v836_v45 = vmax.f32 %v570_v37, 0.0  ;;  %2353 = vmatmul.mubr.msk.f32.gmra.mrb[10].mxu1 %vm898_vm2, %v834_v17 }
 0x103   :  { %v835_v48 = vmax.f32 %v565_v42, 0.0  ;;  %v2256_v51 = vpop.f32.mrb[14].mxu0 }
 0x104   :  { %v580_v52 = vadd.f32 %v2256_v51, %v3104_v29  ;;  %v574_v55 = vpop.f32.mrb[15].mxu0 }
 0x105   :  { %v575_v56 = vadd.f32 %v3104_v29, %v574_v55  ;;  %2355 = vmatprep.mubr.msk.f32.mxu1 %vm898_vm2, %v835_v48 }
 0x106   :  { %v838_v58 = vmax.f32 %v580_v52, 0.0  ;;  %2356 = vmatmul.mubr.msk.f32.gmra.mrb[12].mxu1 %vm898_vm2, %v836_v45 }
 0x107   :  { %v837_v62 = vmax.f32 %v575_v56, 0.0  ;;  %v2259_v63 = vpop.f32.mrb[16].mxu0 }
 0x108   :  { %v590_v0 = vadd.f32 %v2259_v63, %v3104_v29  ;;  %v584_v1 = vpop.f32.mrb[17].mxu0 }
 0x109   :  { %v585_v5 = vadd.f32 %v3104_v29, %v584_v1  ;;  %2358 = vmatprep.mubr.msk.f32.mxu1 %vm898_vm2, %v837_v62 }
 0x10a   :  { %v840_v11 = vmax.f32 %v590_v0, 0.0  ;;  %2359 = vmatmul.mubr.msk.f32.gmra.mrb[14].mxu1 %vm898_vm2, %v838_v58 }
 0x10b   :  { %v839_v12 = vmax.f32 %v585_v5, 0.0  ;;  %v2262_v15 = vpop.f32.mrb[18].mxu0 }
 0x10c   :  { %v600_v16 = vadd.f32 %v2262_v15, %v3104_v29  ;;  %v594_v19 = vpop.f32.mrb[19].mxu0 }
 0x10d   :  { %v595_v21 = vadd.f32 %v3104_v29, %v594_v19  ;;  %2361 = vmatprep.mubr.msk.f32.mxu1 %vm898_vm2, %v839_v12 }
 0x10e   :  { %v842_v22 = vmax.f32 %v600_v16, 0.0  ;;  %2362 = vmatmul.mubr.msk.f32.gmra.mrb[16].mxu1 %vm898_vm2, %v840_v11 }
 0x10f   :  { %v841_v32 = vmax.f32 %v595_v21, 0.0  ;;  %v2265_v24 = vpop.f32.mrb[20].mxu0 }
 0x110   :  { %v610_v25 = vadd.f32 %v2265_v24, %v3104_v29  ;;  %v604_v33 = vpop.f32.mrb[21].mxu0 }
 0x111   :  { %v605_v30 = vadd.f32 %v3104_v29, %v604_v33  ;;  %2364 = vmatprep.mubr.msk.f32.mxu1 %vm898_vm2, %v841_v32 }
 0x112   :  { %v844_v36 = vmax.f32 %v610_v25, 0.0  ;;  %2365 = vmatmul.mubr.msk.f32.gmra.mrb[18].mxu1 %vm898_vm2, %v842_v22 }
 0x113   :  { %v843_v43 = vmax.f32 %v605_v30, 0.0  ;;  %v2268_v44 = vpop.f32.mrb[22].mxu0 }
 0x114   :  { %v620_v49 = vadd.f32 %v2268_v44, %v3104_v29  ;;  %v614_v53 = vpop.f32.mrb[23].mxu0 }
 0x115   :  { %v615_v54 = vadd.f32 %v3104_v29, %v614_v53  ;;  %2367 = vmatprep.mubr.msk.f32.mxu1 %vm898_vm2, %v843_v43 }
 0x116   :  { %v846_v60 = vmax.f32 %v620_v49, 0.0  ;;  %2368 = vmatmul.mubr.msk.f32.gmra.mrb[20].mxu1 %vm898_vm2, %v844_v36 }
 0x117   :  { %v845_v3 = vmax.f32 %v615_v54, 0.0  ;;  %v2271_v4 = vpop.f32.mrb[24].mxu0 }
 0x118   :  { %v630_v9 = vadd.f32 %v2271_v4, %v3104_v29  ;;  %v624_v13 = vpop.f32.mrb[25].mxu0 }
 0x119   :  { %v625_v14 = vadd.f32 %v3104_v29, %v624_v13  ;;  %2370 = vmatprep.mubr.msk.f32.mxu1 %vm898_vm2, %v845_v3 }
 0x11a   :  { %v848_v20 = vmax.f32 %v630_v9, 0.0  ;;  %2371 = vmatmul.mubr.msk.f32.gmra.mrb[22].mxu1 %vm898_vm2, %v846_v60 }
 0x11b   :  { %v847_v27 = vmax.f32 %v625_v14, 0.0  ;;  %v2274_v28 = vpop.f32.mrb[26].mxu0 }
 0x11c   :  { %v640_v35 = vadd.f32 %v2274_v28, %v3104_v29  ;;  %v634_v40 = vpop.f32.mrb[27].mxu0 }
 0x11d   :  { %v635_v41 = vadd.f32 %v3104_v29, %v634_v40  ;;  %2373 = vmatprep.mubr.msk.f32.mxu1 %vm898_vm2, %v847_v27 }
 0x11e   :  { %v850_v50 = vmax.f32 %v640_v35, 0.0  ;;  %2374 = vmatmul.mubr.msk.f32.gmra.mrb[24].mxu1 %vm898_vm2, %v848_v20 }
 0x11f   :  { %v849_v59 = vmax.f32 %v635_v41, 0.0  ;;  %v2277_v61 = vpop.f32.mrb[28].mxu0 }
 0x120   :  { %v650_v2 = vadd.f32 %v2277_v61, %v3104_v29  ;;  %v644_v8 = vpop.f32.mrb[29].mxu0 }
 0x121   :  { %v645_v10 = vadd.f32 %v3104_v29, %v644_v8  ;;  %2376 = vmatprep.mubr.msk.f32.mxu1 %vm898_vm2, %v849_v59 }
 0x122   :  { %v852_v18 = vmax.f32 %v650_v2, 0.0  ;;  %2377 = vmatmul.mubr.msk.f32.gmra.mrb[26].mxu1 %vm898_vm2, %v850_v50 }
 0x123   :  { %v851_v26 = vmax.f32 %v645_v10, 0.0  ;;  %v2280_v31 = vpop.f32.mrb[30].mxu0 }
 0x124   :  { %v660_v38 = vadd.f32 %v2280_v31, %v3104_v29  ;;  %v654_v46 = vpop.f32.mrb[31].mxu0 }
 0x125   :  { %v655_v47 = vadd.f32 %v3104_v29, %v654_v46  ;;  %2379 = vmatprep.mubr.msk.f32.mxu1 %vm898_vm2, %v851_v26 }
 0x126   :  { %v854_v57 = vmax.f32 %v660_v38, 0.0  ;;  %2380 = vmatmul.mubr.msk.f32.gmra.mrb[28].mxu1 %vm898_vm2, %v852_v18 }
 0x127   :  { %v853_v6 = vmax.f32 %v655_v47, 0.0  ;;  %v2283_v7 = vpop.f32.mrb[32].mxu0 }
 0x128   :  { %v670_v17 = vadd.f32 %v2283_v7, %v3104_v29  ;;  %v664_v23 = vpop.f32.mrb[33].mxu0 }
 0x129   :  { %v665_v34 = vadd.f32 %v3104_v29, %v664_v23  ;;  %2382 = vmatprep.mubr.msk.f32.mxu1 %vm898_vm2, %v853_v6 }
 0x12a   :  { %v856_v37 = vmax.f32 %v670_v17, 0.0  ;;  %2383 = vmatmul.mubr.msk.f32.gmra.mrb[30].mxu1 %vm898_vm2, %v854_v57 }
 0x12b   :  { %v855_v39 = vmax.f32 %v665_v34, 0.0  ;;  %v2286_v42 = vpop.f32.mrb[34].mxu0 }
 0x12c   :  { %v680_v45 = vadd.f32 %v2286_v42, %v3104_v29  ;;  %v674_v48 = vpop.f32.mrb[35].mxu0 }
 0x12d   :  { %v675_v51 = vadd.f32 %v3104_v29, %v674_v48  ;;  %2385 = vmatprep.mubr.msk.f32.mxu1 %vm898_vm2, %v855_v39 }
 0x12e   :  { %v858_v52 = vmax.f32 %v680_v45, 0.0  ;;  %2386 = vmatmul.mubr.msk.f32.gmra.mrb[32].mxu1 %vm898_vm2, %v856_v37 }
 0x12f   :  { %v857_v55 = vmax.f32 %v675_v51, 0.0  ;;  %v2289_v56 = vpop.f32.mrb[36].mxu0 }
 0x130   :  { %v690_v58 = vadd.f32 %v2289_v56, %v3104_v29  ;;  %v684_v62 = vpop.f32.mrb[37].mxu0 }
 0x131   :  { %v685_v63 = vadd.f32 %v3104_v29, %v684_v62  ;;  %2388 = vmatprep.mubr.msk.f32.mxu1 %vm898_vm2, %v857_v55 }
 0x132   :  { %v860_v0 = vmax.f32 %v690_v58, 0.0  ;;  %2389 = vmatmul.mubr.msk.f32.gmra.mrb[34].mxu1 %vm898_vm2, %v858_v52 }
 0x133   :  { %v859_v1 = vmax.f32 %v685_v63, 0.0  ;;  %v2292_v5 = vpop.f32.mrb[38].mxu0 }
 0x134   :  { %v700_v11 = vadd.f32 %v2292_v5, %v3104_v29  ;;  %v694_v12 = vpop.f32.mrb[39].mxu0 }
 0x135   :  { %v695_v15 = vadd.f32 %v3104_v29, %v694_v12  ;;  %2391 = vmatprep.mubr.msk.f32.mxu1 %vm898_vm2, %v859_v1 }
 0x136   :  { %v862_v16 = vmax.f32 %v700_v11, 0.0  ;;  %2392 = vmatmul.mubr.msk.f32.gmra.mrb[36].mxu1 %vm898_vm2, %v860_v0 }
 0x137   :  { %v861_v19 = vmax.f32 %v695_v15, 0.0  ;;  %v2295_v21 = vpop.f32.mrb[40].mxu0 }
 0x138   :  { %v710_v22 = vadd.f32 %v2295_v21, %v3104_v29  ;;  %v704_v32 = vpop.f32.mrb[41].mxu0 }
 0x139   :  { %v705_v24 = vadd.f32 %v3104_v29, %v704_v32  ;;  %2394 = vmatprep.mubr.msk.f32.mxu1 %vm898_vm2, %v861_v19 }
 0x13a   :  { %v864_v25 = vmax.f32 %v710_v22, 0.0  ;;  %2395 = vmatmul.mubr.msk.f32.gmra.mrb[38].mxu1 %vm898_vm2, %v862_v16 }
 0x13b   :  { %v863_v33 = vmax.f32 %v705_v24, 0.0  ;;  %v2298_v30 = vpop.f32.mrb[42].mxu0 }
 0x13c   :  { %v720_v36 = vadd.f32 %v2298_v30, %v3104_v29  ;;  %v714_v43 = vpop.f32.mrb[43].mxu0 }
 0x13d   :  { %v715_v44 = vadd.f32 %v3104_v29, %v714_v43  ;;  %2397 = vmatprep.mubr.msk.f32.mxu1 %vm898_vm2, %v863_v33 }
 0x13e   :  { %v866_v49 = vmax.f32 %v720_v36, 0.0  ;;  %2398 = vmatmul.mubr.msk.f32.gmra.mrb[40].mxu1 %vm898_vm2, %v864_v25 }
 0x13f   :  { %v865_v53 = vmax.f32 %v715_v44, 0.0  ;;  %v2301_v54 = vpop.f32.mrb[44].mxu0  ;;  %v3237_v44 = vld [vmem:[%s3766_s5] ss:$0 sm:$0xff] }
 0x140   :  { %v730_v60 = vadd.f32 %v2301_v54, %v3104_v29  ;;  %v724_v3 = vpop.f32.mrb[45].mxu0 }
 0x141   :  { %v725_v4 = vadd.f32 %v3104_v29, %v724_v3  ;;  %2400 = vmatprep.mubr.msk.f32.mxu1 %vm898_vm2, %v865_v53 }
 0x142   :  { %v868_v9 = vmax.f32 %v730_v60, 0.0  ;;  %2401 = vmatmul.mubr.msk.f32.gmra.mrb[42].mxu1 %vm898_vm2, %v866_v49  ;;  %v3244_v60 = vld [vmem:[%s3767_s6] ss:$0 sm:$0xff] }
 0x143   :  { %v867_v13 = vmax.f32 %v725_v4, 0.0  ;;  %v2304_v14 = vpop.f32.mrb[46].mxu0 }
 0x144   :  { %v740_v20 = vadd.f32 %v2304_v14, %v3104_v29  ;;  %v734_v27 = vpop.f32.mrb[47].mxu0 }
 0x145   :  { %v735_v28 = vadd.f32 %v3104_v29, %v734_v27  ;;  %2403 = vmatprep.mubr.msk.f32.mxu1 %vm898_vm2, %v867_v13 }
 0x146   :  { %v870_v35 = vmax.f32 %v740_v20, 0.0  ;;  %2404 = vmatmul.mubr.msk.f32.gmra.mrb[44].mxu1 %vm898_vm2, %v868_v9 }
 0x147   :  { %v869_v40 = vmax.f32 %v735_v28, 0.0  ;;  %v2307_v41 = vpop.f32.mrb[48].mxu0 }
 0x148   :  { %v750_v50 = vadd.f32 %v2307_v41, %v3104_v29  ;;  %v744_v59 = vpop.f32.mrb[49].mxu0 }
 0x149   :  { %v745_v61 = vadd.f32 %v3104_v29, %v744_v59  ;;  %2406 = vmatprep.mubr.msk.f32.mxu1 %vm898_vm2, %v869_v40 }
 0x14a   :  { %v872_v2 = vmax.f32 %v750_v50, 0.0  ;;  %2407 = vmatmul.mubr.msk.f32.gmra.mrb[46].mxu1 %vm898_vm2, %v870_v35 }
 0x14b   :  { %v871_v8 = vmax.f32 %v745_v61, 0.0  ;;  %v2310_v10 = vpop.f32.mrb[50].mxu0 }
 0x14c   :  { %v760_v18 = vadd.f32 %v2310_v10, %v3104_v29  ;;  %v754_v26 = vpop.f32.mrb[51].mxu0 }
 0x14d   :  { %v755_v31 = vadd.f32 %v3104_v29, %v754_v26  ;;  %2409 = vmatprep.mubr.msk.f32.mxu1 %vm898_vm2, %v871_v8 }
 0x14e   :  { %v874_v38 = vmax.f32 %v760_v18, 0.0  ;;  %2410 = vmatmul.mubr.msk.f32.gmra.mrb[48].mxu1 %vm898_vm2, %v872_v2 }
 0x14f   :  { %v873_v46 = vmax.f32 %v755_v31, 0.0  ;;  %v2313_v47 = vpop.f32.mrb[52].mxu0 }
 0x150   :  { %v770_v57 = vadd.f32 %v2313_v47, %v3104_v29  ;;  %v764_v6 = vpop.f32.mrb[53].mxu0 }
 0x151   :  { %v765_v7 = vadd.f32 %v3104_v29, %v764_v6  ;;  %2412 = vmatprep.mubr.msk.f32.mxu1 %vm898_vm2, %v873_v46 }
 0x152   :  { %v876_v17 = vmax.f32 %v770_v57, 0.0  ;;  %2413 = vmatmul.mubr.msk.f32.gmra.mrb[50].mxu1 %vm898_vm2, %v874_v38 }
 0x153   :  { %v875_v23 = vmax.f32 %v765_v7, 0.0  ;;  %v2316_v34 = vpop.f32.mrb[54].mxu0 }
 0x154   :  { %v780_v37 = vadd.f32 %v2316_v34, %v3104_v29  ;;  %v774_v39 = vpop.f32.mrb[55].mxu0 }
 0x155   :  { %v775_v42 = vadd.f32 %v3104_v29, %v774_v39  ;;  %2415 = vmatprep.mubr.msk.f32.mxu1 %vm898_vm2, %v875_v23 }
 0x156   :  { %v878_v45 = vmax.f32 %v780_v37, 0.0  ;;  %2416 = vmatmul.mubr.msk.f32.gmra.mrb[52].mxu1 %vm898_vm2, %v876_v17 }
 0x157   :  { %v877_v48 = vmax.f32 %v775_v42, 0.0  ;;  %v2319_v51 = vpop.f32.mrb[56].mxu0 }
 0x158   :  { %v790_v52 = vadd.f32 %v2319_v51, %v3104_v29  ;;  %v784_v55 = vpop.f32.mrb[57].mxu0 }
 0x159   :  { %v785_v56 = vadd.f32 %v3104_v29, %v784_v55  ;;  %2418 = vmatprep.mubr.msk.f32.mxu1 %vm898_vm2, %v877_v48 }
 0x15a   :  { %v880_v58 = vmax.f32 %v790_v52, 0.0  ;;  %2419 = vmatmul.mubr.msk.f32.gmra.mrb[54].mxu1 %vm898_vm2, %v878_v45 }
 0x15b   :  { %v879_v62 = vmax.f32 %v785_v56, 0.0  ;;  %v2322_v63 = vpop.f32.mrb[58].mxu0 }
 0x15c   :  { %v800_v0 = vadd.f32 %v2322_v63, %v3104_v29  ;;  %v794_v1 = vpop.f32.mrb[59].mxu0 }
 0x15d   :  { %v795_v5 = vadd.f32 %v3104_v29, %v794_v1  ;;  %2421 = vmatprep.mubr.msk.f32.mxu1 %vm898_vm2, %v879_v62 }
 0x15e   :  { %v882_v11 = vmax.f32 %v800_v0, 0.0  ;;  %2422 = vmatmul.mubr.msk.f32.gmra.mrb[56].mxu1 %vm898_vm2, %v880_v58 }
 0x15f   :  { %v881_v12 = vmax.f32 %v795_v5, 0.0  ;;  %v2325_v15 = vpop.f32.mrb[60].mxu0 }
 0x160   :  { %v810_v16 = vadd.f32 %v2325_v15, %v3104_v29  ;;  %v804_v19 = vpop.f32.mrb[61].mxu0 }
 0x161   :  { %v805_v21 = vadd.f32 %v3104_v29, %v804_v19  ;;  %2424 = vmatprep.mubr.msk.f32.mxu1 %vm898_vm2, %v881_v12 }
 0x162   :  { %v884_v22 = vmax.f32 %v810_v16, 0.0  ;;  %2425 = vmatmul.mubr.msk.f32.gmra.mrb[58].mxu1 %vm898_vm2, %v882_v11 }
 0x163   :  { %v883_v32 = vmax.f32 %v805_v21, 0.0  ;;  %v2328_v24 = vpop.f32.mrb[62].mxu0 }
 0x164   :  { %v820_v25 = vadd.f32 %v2328_v24, %v3104_v29  ;;  %v814_v33 = vpop.f32.mrb[63].mxu0 }
 0x165   :  { %v815_v30 = vadd.f32 %v3104_v29, %v814_v33  ;;  %2427 = vmatprep.mubr.msk.f32.mxu1 %vm898_vm2, %v883_v32 }
 0x166   :  { %v886_v36 = vmax.f32 %v820_v25, 0.0  ;;  %2428 = vmatmul.mubr.msk.f32.gmra.mrb[60].mxu1 %vm898_vm2, %v884_v22 }
 0x167   :  { %v885_v43 = vmax.f32 %v815_v30, 0.0 }
 0x169   :  { %2430 = vmatprep.mubr.msk.f32.mxu1 %vm898_vm2, %v885_v43 }
 0x16a   :  { %2431 = vmatmul.mubr.msk.f32.gmra.mrb[62].mxu1 %vm898_vm2, %v886_v36 }
 0x1c1   :  { %v2339_v49 = vpop.f32.mrb[0].mxu1 }
 0x1c2   :  { %v1175_v53 = vadd.f32 %v2339_v49, %v3237_v44  ;;  %v1169_v54 = vpop.f32.mrb[1].mxu1 }
 0x1c3   :  { %v1170_v29 = vadd.f32 %v3237_v44, %v1169_v54 }
 0x1c4   :  { %v1489_v3 = vmax.f32 %v1175_v53, 0.0 }
 0x1c5   :  { %v1488_v4 = vmax.f32 %v1170_v29, 0.0  ;;  %v2342_v9 = vpop.f32.mrb[2].mxu1 }
 0x1c6   :  { %v1185_v13 = vadd.f32 %v2342_v9, %v3237_v44  ;;  %v1179_v14 = vpop.f32.mrb[3].mxu1  ;;  %v1560_v20 = vmul.f32 %v3244_v60, %v1489_v3 }
 0x1c7   :  { %v1180_v27 = vadd.f32 %v3237_v44, %v1179_v14  ;;  %v1559_v40 = vmul.f32 %v3244_v60, %v1488_v4 }
 0x1c8   :  { %v1491_v28 = vmax.f32 %v1185_v13, 0.0  ;;  %v1626_v35 = vsel %vm898_vm2, %v1560_v20, 0.0 }
 0x1c9   :  { %v1490_v41 = vmax.f32 %v1180_v27, 0.0  ;;  %1627 = vadd.xlane.f32.xlu0 %v1626_v35  ;;  %v2345_v50 = vpop.f32.mrb[4].mxu1  ;;  %v1623_v26 = vsel %vm898_vm2, %v1559_v40, 0.0 }
 0x1ca   :  { %v1195_v59 = vadd.f32 %v2345_v50, %v3237_v44  ;;  %v1189_v61 = vpop.f32.mrb[5].mxu1  ;;  %v1562_v2 = vmul.f32 %v3244_v60, %v1491_v28 }
 0x1cb   :  { %v1190_v8 = vadd.f32 %v3237_v44, %v1189_v61  ;;  %v1561_v31 = vmul.f32 %v3244_v60, %v1490_v41 }
 0x1cc   :  { %v1493_v10 = vmax.f32 %v1195_v59, 0.0  ;;  %v1632_v18 = vsel %vm898_vm2, %v1562_v2, 0.0 }
 0x1cd   :  { %v1492_v38 = vmax.f32 %v1190_v8, 0.0  ;;  %1633 = vadd.xlane.f32.xlu1 %v1632_v18  ;;  %v2348_v46 = vpop.f32.mrb[6].mxu1  ;;  %1624 = vadd.xlane.f32.xlu0 %v1623_v26  ;;  %v1629_v23 = vsel %vm898_vm2, %v1561_v31, 0.0 }
 0x1ce   :  { %v1205_v47 = vadd.f32 %v2348_v46, %v3237_v44  ;;  %v1199_v57 = vpop.f32.mrb[7].mxu1  ;;  %v1564_v34 = vmul.f32 %v3244_v60, %v1493_v10 }
 0x1cf   :  { %v1200_v6 = vadd.f32 %v3237_v44, %v1199_v57  ;;  %v1563_v7 = vmul.f32 %v3244_v60, %v1492_v38 }
 0x1d0   :  { %v1495_v17 = vmax.f32 %v1205_v47, 0.0  ;;  %v1638_v56 = vsel %vm898_vm2, %v1564_v34, 0.0 }
 0x1d1   :  { %v1494_v37 = vmax.f32 %v1200_v6, 0.0  ;;  %v2351_v39 = vpop.f32.mrb[8].mxu1  ;;  %1630 = vadd.xlane.f32.xlu1 %v1629_v23  ;;  %v1635_v42 = vsel %vm898_vm2, %v1563_v7, 0.0 }
 0x1d2   :  { %v1215_v45 = vadd.f32 %v2351_v39, %v3237_v44  ;;  %v1209_v48 = vpop.f32.mrb[9].mxu1  ;;  %1636 = vadd.xlane.f32.xlu0 %v1635_v42  ;;  %v1566_v58 = vmul.f32 %v3244_v60, %v1495_v17 }
 0x1d3   :  { %v1210_v51 = vadd.f32 %v3237_v44, %v1209_v48  ;;  %v1565_v52 = vmul.f32 %v3244_v60, %v1494_v37 }
 0x1d4   :  { %v1497_v55 = vmax.f32 %v1215_v45, 0.0  ;;  %v1644_v16 = vsel %vm898_vm2, %v1566_v58, 0.0 }
 0x1d5   :  { %v1496_v62 = vmax.f32 %v1210_v51, 0.0  ;;  %v2354_v63 = vpop.f32.mrb[10].mxu1  ;;  %1639 = vadd.xlane.f32.xlu1 %v1638_v56  ;;  %v1641_v0 = vsel %vm898_vm2, %v1565_v52, 0.0 }
 0x1d6   :  { %v1225_v1 = vadd.f32 %v2354_v63, %v3237_v44  ;;  %v1219_v5 = vpop.f32.mrb[11].mxu1  ;;  %1642 = vadd.xlane.f32.xlu0 %v1641_v0  ;;  %v1568_v19 = vmul.f32 %v3244_v60, %v1497_v55 }
 0x1d7   :  { %v1220_v11 = vadd.f32 %v3237_v44, %v1219_v5  ;;  %v1567_v12 = vmul.f32 %v3244_v60, %v1496_v62 }
 0x1d8   :  { %v1499_v15 = vmax.f32 %v1225_v1, 0.0  ;;  %v1650_v43 = vsel %vm898_vm2, %v1568_v19, 0.0 }
 0x1d9   :  { %v1498_v21 = vmax.f32 %v1220_v11, 0.0  ;;  %v2357_v22 = vpop.f32.mrb[12].mxu1  ;;  %1645 = vadd.xlane.f32.xlu1 %v1644_v16  ;;  %v1647_v32 = vsel %vm898_vm2, %v1567_v12, 0.0 }
 0x1da   :  { %v1235_v24 = vadd.f32 %v2357_v22, %v3237_v44  ;;  %v1229_v25 = vpop.f32.mrb[13].mxu1  ;;  %1648 = vadd.xlane.f32.xlu0 %v1647_v32  ;;  %v1570_v49 = vmul.f32 %v3244_v60, %v1499_v15 }
 0x1db   :  { %v1230_v33 = vadd.f32 %v3237_v44, %v1229_v25  ;;  %v1569_v30 = vmul.f32 %v3244_v60, %v1498_v21 }
 0x1dc   :  { %v1501_v36 = vmax.f32 %v1235_v24, 0.0  ;;  %v1656_v20 = vsel %vm898_vm2, %v1570_v49, 0.0 }
 0x1dd   :  { %v1500_v53 = vmax.f32 %v1230_v33, 0.0  ;;  %v2360_v54 = vpop.f32.mrb[14].mxu1  ;;  %1651 = vadd.xlane.f32.xlu1 %v1650_v43  ;;  %v1653_v29 = vsel %vm898_vm2, %v1569_v30, 0.0 }
 0x1de   :  { %v1245_v3 = vadd.f32 %v2360_v54, %v3237_v44  ;;  %v1239_v4 = vpop.f32.mrb[15].mxu1  ;;  %1654 = vadd.xlane.f32.xlu0 %v1653_v29  ;;  %v1572_v27 = vmul.f32 %v3244_v60, %v1501_v36 }
 0x1df   :  { %v1240_v9 = vadd.f32 %v3237_v44, %v1239_v4  ;;  %v1571_v13 = vmul.f32 %v3244_v60, %v1500_v53 }
 0x1e0   :  { %v1503_v14 = vmax.f32 %v1245_v3, 0.0  ;;  %v1662_v8 = vsel %vm898_vm2, %v1572_v27, 0.0 }
 0x1e1   :  { %v1502_v28 = vmax.f32 %v1240_v9, 0.0  ;;  %v2363_v35 = vpop.f32.mrb[16].mxu1  ;;  %1657 = vadd.xlane.f32.xlu1 %v1656_v20  ;;  %v1659_v40 = vsel %vm898_vm2, %v1571_v13, 0.0 }
 0x1e2   :  { %v1255_v41 = vadd.f32 %v2363_v35, %v3237_v44  ;;  %v1249_v50 = vpop.f32.mrb[17].mxu1  ;;  %1660 = vadd.xlane.f32.xlu0 %v1659_v40  ;;  %v1574_v10 = vmul.f32 %v3244_v60, %v1503_v14 }
 0x1e3   :  { %v1250_v59 = vadd.f32 %v3237_v44, %v1249_v50  ;;  %v1573_v61 = vmul.f32 %v3244_v60, %v1502_v28 }
 0x1e4   :  { %v1505_v2 = vmax.f32 %v1255_v41, 0.0  ;;  %v1668_v7 = vsel %vm898_vm2, %v1574_v10, 0.0 }
 0x1e5   :  { %v1504_v18 = vmax.f32 %v1250_v59, 0.0  ;;  %v2366_v26 = vpop.f32.mrb[18].mxu1  ;;  %1663 = vadd.xlane.f32.xlu1 %v1662_v8  ;;  %v1665_v31 = vsel %vm898_vm2, %v1573_v61, 0.0 }
 0x1e6   :  { %v1265_v38 = vadd.f32 %v2366_v26, %v3237_v44  ;;  %v1259_v46 = vpop.f32.mrb[19].mxu1  ;;  %1666 = vadd.xlane.f32.xlu0 %v1665_v31  ;;  %v1576_v17 = vmul.f32 %v3244_v60, %v1505_v2 }
 0x1e7   :  { %v1260_v47 = vadd.f32 %v3237_v44, %v1259_v46  ;;  %v1575_v57 = vmul.f32 %v3244_v60, %v1504_v18 }
 0x1e8   :  { %v1507_v6 = vmax.f32 %v1265_v38, 0.0  ;;  %v1674_v52 = vsel %vm898_vm2, %v1576_v17, 0.0 }
 0x1e9   :  { %v1506_v23 = vmax.f32 %v1260_v47, 0.0  ;;  %v2369_v34 = vpop.f32.mrb[20].mxu1  ;;  %1669 = vadd.xlane.f32.xlu1 %v1668_v7  ;;  %v1671_v37 = vsel %vm898_vm2, %v1575_v57, 0.0 }
 0x1ea   :  { %v1275_v39 = vadd.f32 %v2369_v34, %v3237_v44  ;;  %v1269_v42 = vpop.f32.mrb[21].mxu1  ;;  %1672 = vadd.xlane.f32.xlu0 %v1671_v37  ;;  %v1578_v55 = vmul.f32 %v3244_v60, %v1507_v6 }
 0x1eb   :  { %v1270_v45 = vadd.f32 %v3237_v44, %v1269_v42  ;;  %v1577_v48 = vmul.f32 %v3244_v60, %v1506_v23 }
 0x1ec   :  { %v1509_v51 = vmax.f32 %v1275_v39, 0.0  ;;  %v1680_v12 = vsel %vm898_vm2, %v1578_v55, 0.0 }
 0x1ed   :  { %v1508_v56 = vmax.f32 %v1270_v45, 0.0  ;;  %v2372_v58 = vpop.f32.mrb[22].mxu1  ;;  %1675 = vadd.xlane.f32.xlu1 %v1674_v52  ;;  %v1677_v62 = vsel %vm898_vm2, %v1577_v48, 0.0 }
 0x1ee   :  { %v1285_v63 = vadd.f32 %v2372_v58, %v3237_v44  ;;  %v1279_v0 = vpop.f32.mrb[23].mxu1  ;;  %1678 = vadd.xlane.f32.xlu0 %v1677_v62  ;;  %v1580_v15 = vmul.f32 %v3244_v60, %v1509_v51 }
 0x1ef   :  { %v1280_v1 = vadd.f32 %v3237_v44, %v1279_v0  ;;  %v1579_v5 = vmul.f32 %v3244_v60, %v1508_v56 }
 0x1f0   :  { %v1511_v11 = vmax.f32 %v1285_v63, 0.0  ;;  %v1686_v30 = vsel %vm898_vm2, %v1580_v15, 0.0 }
 0x1f1   :  { %v1510_v16 = vmax.f32 %v1280_v1, 0.0  ;;  %v2375_v19 = vpop.f32.mrb[24].mxu1  ;;  %1681 = vadd.xlane.f32.xlu1 %v1680_v12  ;;  %v1683_v21 = vsel %vm898_vm2, %v1579_v5, 0.0 }
 0x1f2   :  { %v1295_v22 = vadd.f32 %v2375_v19, %v3237_v44  ;;  %v1289_v32 = vpop.f32.mrb[25].mxu1  ;;  %1684 = vadd.xlane.f32.xlu0 %v1683_v21  ;;  %v1582_v36 = vmul.f32 %v3244_v60, %v1511_v11 }
 0x1f3   :  { %v1290_v24 = vadd.f32 %v3237_v44, %v1289_v32  ;;  %v1581_v25 = vmul.f32 %v3244_v60, %v1510_v16 }
 0x1f4   :  { %v1513_v33 = vmax.f32 %v1295_v22, 0.0  ;;  %v1692_v13 = vsel %vm898_vm2, %v1582_v36, 0.0 }
 0x1f5   :  { %v1512_v43 = vmax.f32 %v1290_v24, 0.0  ;;  %v2378_v49 = vpop.f32.mrb[26].mxu1  ;;  %1687 = vadd.xlane.f32.xlu1 %v1686_v30  ;;  %v1689_v53 = vsel %vm898_vm2, %v1581_v25, 0.0 }
 0x1f6   :  { %v1305_v54 = vadd.f32 %v2378_v49, %v3237_v44  ;;  %v1299_v29 = vpop.f32.mrb[27].mxu1  ;;  %1690 = vadd.xlane.f32.xlu0 %v1689_v53  ;;  %v1584_v14 = vmul.f32 %v3244_v60, %v1513_v33 }
 0x1f7   :  { %v1300_v3 = vadd.f32 %v3237_v44, %v1299_v29  ;;  %v1583_v4 = vmul.f32 %v3244_v60, %v1512_v43 }
 0x1f8   :  { %v1515_v9 = vmax.f32 %v1305_v54, 0.0  ;;  %v1698_v61 = vsel %vm898_vm2, %v1584_v14, 0.0 }
 0x1f9   :  { %v1514_v20 = vmax.f32 %v1300_v3, 0.0  ;;  %v2381_v27 = vpop.f32.mrb[28].mxu1  ;;  %1693 = vadd.xlane.f32.xlu1 %v1692_v13  ;;  %v1695_v28 = vsel %vm898_vm2, %v1583_v4, 0.0 }
 0x1fa   :  { %v1315_v35 = vadd.f32 %v2381_v27, %v3237_v44  ;;  %v1309_v40 = vpop.f32.mrb[29].mxu1  ;;  %1696 = vadd.xlane.f32.xlu0 %v1695_v28  ;;  %v1586_v2 = vmul.f32 %v3244_v60, %v1515_v9 }
 0x1fb   :  { %v1310_v41 = vadd.f32 %v3237_v44, %v1309_v40  ;;  %v1585_v50 = vmul.f32 %v3244_v60, %v1514_v20 }
 0x1fc   :  { %v1517_v59 = vmax.f32 %v1315_v35, 0.0  ;;  %v1704_v57 = vsel %vm898_vm2, %v1586_v2, 0.0 }
 0x1fd   :  { %v1516_v8 = vmax.f32 %v1310_v41, 0.0  ;;  %v2384_v10 = vpop.f32.mrb[30].mxu1  ;;  %1699 = vadd.xlane.f32.xlu1 %v1698_v61  ;;  %v1701_v18 = vsel %vm898_vm2, %v1585_v50, 0.0 }
 0x1fe   :  { %v1325_v26 = vadd.f32 %v2384_v10, %v3237_v44  ;;  %v1319_v31 = vpop.f32.mrb[31].mxu1  ;;  %1702 = vadd.xlane.f32.xlu0 %v1701_v18  ;;  %v1588_v6 = vmul.f32 %v3244_v60, %v1517_v59 }
 0x1ff   :  { %v1320_v38 = vadd.f32 %v3237_v44, %v1319_v31  ;;  %v1587_v46 = vmul.f32 %v3244_v60, %v1516_v8 }
 0x200   :  { %v1519_v47 = vmax.f32 %v1325_v26, 0.0  ;;  %v1710_v48 = vsel %vm898_vm2, %v1588_v6, 0.0 }
 0x201   :  { %v1518_v7 = vmax.f32 %v1320_v38, 0.0  ;;  %v2387_v17 = vpop.f32.mrb[32].mxu1  ;;  %1705 = vadd.xlane.f32.xlu1 %v1704_v57  ;;  %v1707_v23 = vsel %vm898_vm2, %v1587_v46, 0.0 }
 0x202   :  { %v1335_v34 = vadd.f32 %v2387_v17, %v3237_v44  ;;  %v1329_v37 = vpop.f32.mrb[33].mxu1  ;;  %1708 = vadd.xlane.f32.xlu0 %v1707_v23  ;;  %v1590_v51 = vmul.f32 %v3244_v60, %v1519_v47 }
 0x203   :  { %v1330_v39 = vadd.f32 %v3237_v44, %v1329_v37  ;;  %v1589_v42 = vmul.f32 %v3244_v60, %v1518_v7 }
 0x204   :  { %v1521_v45 = vmax.f32 %v1335_v34, 0.0  ;;  %v1716_v5 = vsel %vm898_vm2, %v1590_v51, 0.0 }
 0x205   :  { %v1520_v52 = vmax.f32 %v1330_v39, 0.0  ;;  %v2390_v55 = vpop.f32.mrb[34].mxu1  ;;  %1711 = vadd.xlane.f32.xlu1 %v1710_v48  ;;  %v1713_v56 = vsel %vm898_vm2, %v1589_v42, 0.0 }
 0x206   :  { %v1345_v58 = vadd.f32 %v2390_v55, %v3237_v44  ;;  %v1339_v62 = vpop.f32.mrb[35].mxu1  ;;  %1714 = vadd.xlane.f32.xlu0 %v1713_v56  ;;  %v1592_v11 = vmul.f32 %v3244_v60, %v1521_v45 }
 0x207   :  { %v1340_v63 = vadd.f32 %v3237_v44, %v1339_v62  ;;  %v1591_v0 = vmul.f32 %v3244_v60, %v1520_v52 }
 0x208   :  { %v1523_v1 = vmax.f32 %v1345_v58, 0.0  ;;  %v1722_v25 = vsel %vm898_vm2, %v1592_v11, 0.0 }
 0x209   :  { %v1522_v12 = vmax.f32 %v1340_v63, 0.0  ;;  %v2393_v15 = vpop.f32.mrb[36].mxu1  ;;  %1717 = vadd.xlane.f32.xlu1 %v1716_v5  ;;  %v1719_v16 = vsel %vm898_vm2, %v1591_v0, 0.0 }
 0x20a   :  { %v1355_v19 = vadd.f32 %v2393_v15, %v3237_v44  ;;  %v1349_v21 = vpop.f32.mrb[37].mxu1  ;;  %1720 = vadd.xlane.f32.xlu0 %v1719_v16  ;;  %v1594_v33 = vmul.f32 %v3244_v60, %v1523_v1 }
 0x20b   :  { %v1350_v22 = vadd.f32 %v3237_v44, %v1349_v21  ;;  %v1593_v32 = vmul.f32 %v3244_v60, %v1522_v12 }
 0x20c   :  { %v1525_v24 = vmax.f32 %v1355_v19, 0.0  ;;  %v1728_v4 = vsel %vm898_vm2, %v1594_v33, 0.0 }
 0x20d   :  { %v1524_v30 = vmax.f32 %v1350_v22, 0.0  ;;  %v2396_v36 = vpop.f32.mrb[38].mxu1  ;;  %1723 = vadd.xlane.f32.xlu1 %v1722_v25  ;;  %v1725_v43 = vsel %vm898_vm2, %v1593_v32, 0.0 }
 0x20e   :  { %v1365_v49 = vadd.f32 %v2396_v36, %v3237_v44  ;;  %v1359_v53 = vpop.f32.mrb[39].mxu1  ;;  %1726 = vadd.xlane.f32.xlu0 %v1725_v43  ;;  %v1596_v9 = vmul.f32 %v3244_v60, %v1525_v24 }
 0x20f   :  { %v1360_v54 = vadd.f32 %v3237_v44, %v1359_v53  ;;  %v1595_v29 = vmul.f32 %v3244_v60, %v1524_v30 }
 0x210   :  { %v1527_v3 = vmax.f32 %v1365_v49, 0.0  ;;  %v1734_v50 = vsel %vm898_vm2, %v1596_v9, 0.0 }
 0x211   :  { %v1526_v13 = vmax.f32 %v1360_v54, 0.0  ;;  %v2399_v14 = vpop.f32.mrb[40].mxu1  ;;  %1729 = vadd.xlane.f32.xlu1 %v1728_v4  ;;  %v1731_v20 = vsel %vm898_vm2, %v1595_v29, 0.0 }
 0x212   :  { %v1375_v27 = vadd.f32 %v2399_v14, %v3237_v44  ;;  %v1369_v28 = vpop.f32.mrb[41].mxu1  ;;  %1732 = vadd.xlane.f32.xlu0 %v1731_v20  ;;  %v1598_v59 = vmul.f32 %v3244_v60, %v1527_v3 }
 0x213   :  { %v1370_v35 = vadd.f32 %v3237_v44, %v1369_v28  ;;  %v1597_v40 = vmul.f32 %v3244_v60, %v1526_v13 }
 0x214   :  { %v1529_v41 = vmax.f32 %v1375_v27, 0.0  ;;  %v1740_v46 = vsel %vm898_vm2, %v1598_v59, 0.0 }
 0x215   :  { %v1528_v61 = vmax.f32 %v1370_v35, 0.0  ;;  %v2402_v2 = vpop.f32.mrb[42].mxu1  ;;  %1735 = vadd.xlane.f32.xlu1 %v1734_v50  ;;  %v1737_v8 = vsel %vm898_vm2, %v1597_v40, 0.0 }
 0x216   :  { %v1385_v10 = vadd.f32 %v2402_v2, %v3237_v44  ;;  %v1379_v18 = vpop.f32.mrb[43].mxu1  ;;  %1738 = vadd.xlane.f32.xlu0 %v1737_v8  ;;  %v1600_v47 = vmul.f32 %v3244_v60, %v1529_v41 }
 0x217   :  { %v1380_v26 = vadd.f32 %v3237_v44, %v1379_v18  ;;  %v1599_v31 = vmul.f32 %v3244_v60, %v1528_v61 }
 0x218   :  { %v1531_v38 = vmax.f32 %v1385_v10, 0.0  ;;  %v1746_v42 = vsel %vm898_vm2, %v1600_v47, 0.0 }
 0x219   :  { %v1530_v57 = vmax.f32 %v1380_v26, 0.0  ;;  %v2405_v6 = vpop.f32.mrb[44].mxu1  ;;  %1741 = vadd.xlane.f32.xlu1 %v1740_v46  ;;  %v1743_v7 = vsel %vm898_vm2, %v1599_v31, 0.0 }
 0x21a   :  { %v1395_v17 = vadd.f32 %v2405_v6, %v3237_v44  ;;  %v1389_v23 = vpop.f32.mrb[45].mxu1  ;;  %1744 = vadd.xlane.f32.xlu0 %v1743_v7  ;;  %v1602_v45 = vmul.f32 %v3244_v60, %v1531_v38 }
 0x21b   :  { %v1390_v34 = vadd.f32 %v3237_v44, %v1389_v23  ;;  %v1601_v37 = vmul.f32 %v3244_v60, %v1530_v57 }
 0x21c   :  { %v1533_v39 = vmax.f32 %v1395_v17, 0.0  ;;  %v1752_v0 = vsel %vm898_vm2, %v1602_v45, 0.0 }
 0x21d   :  { %v1532_v48 = vmax.f32 %v1390_v34, 0.0  ;;  %v2408_v51 = vpop.f32.mrb[46].mxu1  ;;  %1747 = vadd.xlane.f32.xlu1 %v1746_v42  ;;  %v1749_v52 = vsel %vm898_vm2, %v1601_v37, 0.0 }
 0x21e   :  { %v1405_v55 = vadd.f32 %v2408_v51, %v3237_v44  ;;  %v1399_v56 = vpop.f32.mrb[47].mxu1  ;;  %1750 = vadd.xlane.f32.xlu0 %v1749_v52  ;;  %v1604_v1 = vmul.f32 %v3244_v60, %v1533_v39 }
 0x21f   :  { %v1400_v58 = vadd.f32 %v3237_v44, %v1399_v56  ;;  %v1603_v62 = vmul.f32 %v3244_v60, %v1532_v48 }
 0x220   :  { %v1535_v63 = vmax.f32 %v1405_v55, 0.0  ;;  %v1758_v32 = vsel %vm898_vm2, %v1604_v1, 0.0 }
 0x221   :  { %v1534_v5 = vmax.f32 %v1400_v58, 0.0  ;;  %v2411_v11 = vpop.f32.mrb[48].mxu1  ;;  %1753 = vadd.xlane.f32.xlu1 %v1752_v0  ;;  %v1755_v12 = vsel %vm898_vm2, %v1603_v62, 0.0 }
 0x222   :  { %v1415_v15 = vadd.f32 %v2411_v11, %v3237_v44  ;;  %v1409_v16 = vpop.f32.mrb[49].mxu1  ;;  %1756 = vadd.xlane.f32.xlu0 %v1755_v12  ;;  %v1606_v24 = vmul.f32 %v3244_v60, %v1535_v63 }
 0x223   :  { %v1410_v19 = vadd.f32 %v3237_v44, %v1409_v16  ;;  %v1605_v21 = vmul.f32 %v3244_v60, %v1534_v5 }
 0x224   :  { %v1537_v22 = vmax.f32 %v1415_v15, 0.0  ;;  %v1764_v29 = vsel %vm898_vm2, %v1606_v24, 0.0 }
 0x225   :  { %v1536_v25 = vmax.f32 %v1410_v19, 0.0  ;;  %v2414_v33 = vpop.f32.mrb[50].mxu1  ;;  %1759 = vadd.xlane.f32.xlu1 %v1758_v32  ;;  %v1761_v30 = vsel %vm898_vm2, %v1605_v21, 0.0 }
 0x226   :  { %v1425_v36 = vadd.f32 %v2414_v33, %v3237_v44  ;;  %v1419_v43 = vpop.f32.mrb[51].mxu1  ;;  %1762 = vadd.xlane.f32.xlu0 %v1761_v30  ;;  %v1608_v3 = vmul.f32 %v3244_v60, %v1537_v22 }
 0x227   :  { %v1420_v49 = vadd.f32 %v3237_v44, %v1419_v43  ;;  %v1607_v53 = vmul.f32 %v3244_v60, %v1536_v25 }
 0x228   :  { %v1539_v54 = vmax.f32 %v1425_v36, 0.0  ;;  %v1770_v40 = vsel %vm898_vm2, %v1608_v3, 0.0 }
 0x229   :  { %v1538_v4 = vmax.f32 %v1420_v49, 0.0  ;;  %v2417_v9 = vpop.f32.mrb[52].mxu1  ;;  %1765 = vadd.xlane.f32.xlu1 %v1764_v29  ;;  %v1767_v13 = vsel %vm898_vm2, %v1607_v53, 0.0 }
 0x22a   :  { %v1435_v14 = vadd.f32 %v2417_v9, %v3237_v44  ;;  %v1429_v20 = vpop.f32.mrb[53].mxu1  ;;  %1768 = vadd.xlane.f32.xlu0 %v1767_v13  ;;  %v1610_v41 = vmul.f32 %v3244_v60, %v1539_v54 }
 0x22b   :  { %v1430_v27 = vadd.f32 %v3237_v44, %v1429_v20  ;;  %v1609_v28 = vmul.f32 %v3244_v60, %v1538_v4  ;;  %v3439_v20 = vstv %s3768_s7 }
 0x22c   :  { %v1541_v35 = vmax.f32 %v1435_v14, 0.0  ;;  %v1776_v31 = vsel %vm898_vm2, %v1610_v41, 0.0 }
 0x22d   :  { %v1540_v50 = vmax.f32 %v1430_v27, 0.0  ;;  %v2420_v59 = vpop.f32.mrb[54].mxu1  ;;  %1771 = vadd.xlane.f32.xlu1 %v1770_v40  ;;  %v1773_v61 = vsel %vm898_vm2, %v1609_v28, 0.0 }
 0x22e   :  { %v1445_v2 = vadd.f32 %v2420_v59, %v3237_v44  ;;  %v1439_v8 = vpop.f32.mrb[55].mxu1  ;;  %1774 = vadd.xlane.f32.xlu0 %v1773_v61  ;;  %v1612_v38 = vmul.f32 %v3244_v60, %v1541_v35 }
 0x22f   :  { %v1440_v10 = vadd.f32 %v3237_v44, %v1439_v8  ;;  %v1611_v18 = vmul.f32 %v3244_v60, %v1540_v50 }
 0x230   :  { %v1543_v26 = vmax.f32 %v1445_v2, 0.0  ;;  %v1782_v37 = vsel %vm898_vm2, %v1612_v38, 0.0 }
 0x231   :  { %v1542_v46 = vmax.f32 %v1440_v10, 0.0  ;;  %v2423_v47 = vpop.f32.mrb[56].mxu1  ;;  %1777 = vadd.xlane.f32.xlu1 %v1776_v31  ;;  %v1779_v57 = vsel %vm898_vm2, %v1611_v18, 0.0 }
 0x232   :  { %v1455_v6 = vadd.f32 %v2423_v47, %v3237_v44  ;;  %v1449_v7 = vpop.f32.mrb[57].mxu1  ;;  %1780 = vadd.xlane.f32.xlu0 %v1779_v57  ;;  %v1614_v39 = vmul.f32 %v3244_v60, %v1543_v26 }
 0x233   :  { %v1450_v17 = vadd.f32 %v3237_v44, %v1449_v7  ;;  %v1613_v23 = vmul.f32 %v3244_v60, %v1542_v46 }
 0x234   :  { %v1545_v34 = vmax.f32 %v1455_v6, 0.0  ;;  %v1788_v62 = vsel %vm898_vm2, %v1614_v39, 0.0 }
 0x235   :  { %v1544_v42 = vmax.f32 %v1450_v17, 0.0  ;;  %v2426_v45 = vpop.f32.mrb[58].mxu1  ;;  %1783 = vadd.xlane.f32.xlu1 %v1782_v37  ;;  %v1785_v48 = vsel %vm898_vm2, %v1613_v23, 0.0 }
 0x236   :  { %v1465_v51 = vadd.f32 %v2426_v45, %v3237_v44  ;;  %v1459_v52 = vpop.f32.mrb[59].mxu1  ;;  %1786 = vadd.xlane.f32.xlu0 %v1785_v48  ;;  %v1616_v63 = vmul.f32 %v3244_v60, %v1545_v34 }
 0x237   :  { %v1460_v55 = vadd.f32 %v3237_v44, %v1459_v52  ;;  %v1615_v56 = vmul.f32 %v3244_v60, %v1544_v42 }
 0x238   :  { %v1547_v58 = vmax.f32 %v1465_v51, 0.0  ;;  %v1794_v21 = vsel %vm898_vm2, %v1616_v63, 0.0 }
 0x239   :  { %v1546_v0 = vmax.f32 %v1460_v55, 0.0  ;;  %v2429_v1 = vpop.f32.mrb[60].mxu1  ;;  %1789 = vadd.xlane.f32.xlu1 %v1788_v62  ;;  %v1791_v5 = vsel %vm898_vm2, %v1615_v56, 0.0 }
 0x23a   :  { %v1475_v11 = vadd.f32 %v2429_v1, %v3237_v44  ;;  %v1469_v12 = vpop.f32.mrb[61].mxu1  ;;  %1792 = vadd.xlane.f32.xlu0 %v1791_v5  ;;  %v1618_v22 = vmul.f32 %v3244_v60, %v1547_v58 }
 0x23b   :  { %v1470_v15 = vadd.f32 %v3237_v44, %v1469_v12  ;;  %v1617_v16 = vmul.f32 %v3244_v60, %v1546_v0 }
 0x23c   :  { %v1549_v19 = vmax.f32 %v1475_v11, 0.0  ;;  %v1800_v53 = vsel %vm898_vm2, %v1618_v22, 0.0 }
 0x23d   :  { %v1548_v32 = vmax.f32 %v1470_v15, 0.0  ;;  %v2432_v24 = vpop.f32.mrb[62].mxu1  ;;  %1795 = vadd.xlane.f32.xlu1 %v1794_v21  ;;  %v1797_v25 = vsel %vm898_vm2, %v1617_v16, 0.0 }
 0x23e   :  { %v1485_v33 = vadd.f32 %v2432_v24, %v3237_v44  ;;  %v1479_v30 = vpop.f32.mrb[63].mxu1  ;;  %1798 = vadd.xlane.f32.xlu0 %v1797_v25  ;;  %v1620_v54 = vmul.f32 %v3244_v60, %v1549_v19 }
 0x23f   :  { %v1480_v36 = vadd.f32 %v3237_v44, %v1479_v30  ;;  %v1619_v43 = vmul.f32 %v3244_v60, %v1548_v32 }
 0x240   :  { %v1551_v49 = vmax.f32 %v1485_v33, 0.0  ;;  %v1806_v9 = vsel %vm898_vm2, %v1620_v54, 0.0 }
 0x241   :  { %v1550_v29 = vmax.f32 %v1480_v36, 0.0  ;;  %1801 = vadd.xlane.f32.xlu1 %v1800_v53  ;;  %v1803_v3 = vsel %vm898_vm2, %v1619_v43, 0.0 }
 0x242   :  { %1804 = vadd.xlane.f32.xlu0 %v1803_v3  ;;  %v1622_v13 = vmul.f32 %v3244_v60, %v1551_v49 }
 0x243   :  { %v1621_v4 = vmul.f32 %v3244_v60, %v1550_v29 }
 0x244   :  { %v1812_v14 = vsel %vm898_vm2, %v1622_v13, 0.0 }
 0x245   :  { %1807 = vadd.xlane.f32.xlu1 %v1806_v9  ;;  %v1809_v44 = vsel %vm898_vm2, %v1621_v4, 0.0 }
 0x246   :  { %1810 = vadd.xlane.f32.xlu0 %v1809_v44 }
 0x249   :  { %1813 = vadd.xlane.f32.xlu1 %v1812_v14 }
 0x256   :  { %v1628_v27 = vpop.xlane.xlu0 %1627 }
 0x257   :  { %v1818_v28 = vadd.f32 %v3439_v20, %v1628_v27 }
 0x259   :  { %1883 = vst.msk [vmem:[%s3769_s8 + $0x8] sm:$0xff] %vm1881_vm4, %v1818_v28 }
 0x25a   :  { %v1634_v60 = vpop.xlane.xlu1 %1633  ;;  %v1625_v35 = vpop.xlane.xlu0 %1624 }
 0x25b   :  { %v1820_v40 = vadd.f32 %v3439_v20, %v1634_v60  ;;  %v1817_v41 = vadd.f32 %v3439_v20, %v1625_v35 }
 0x25d   :  { %1885 = vst.msk [vmem:[%s3769_s8 + $0x18] sm:$0xff] %vm1881_vm4, %v1820_v40  ;;  %1882 = vst.msk [vmem:[%s3769_s8] sm:$0xff] %vm1881_vm4, %v1817_v41 }
 0x25e   :  { %v1631_v50 = vpop.xlane.xlu1 %1630 }
 0x25f   :  { %v1819_v59 = vadd.f32 %v3439_v20, %v1631_v50  ;;  %v1637_v61 = vpop.xlane.xlu0 %1636 }
 0x260   :  { %v1821_v2 = vadd.f32 %v3439_v20, %v1637_v61 }
 0x261   :  { %1884 = vst.msk [vmem:[%s3769_s8 + $0x10] sm:$0xff] %vm1881_vm4, %v1819_v59 }
 0x262   :  { %1886 = vst.msk [vmem:[%s3769_s8 + $0x20] sm:$0xff] %vm1881_vm4, %v1821_v2  ;;  %v1640_v8 = vpop.xlane.xlu1 %1639 }
 0x263   :  { %v1822_v10 = vadd.f32 %v3439_v20, %v1640_v8  ;;  %v1643_v18 = vpop.xlane.xlu0 %1642 }
 0x264   :  { %v1823_v26 = vadd.f32 %v3439_v20, %v1643_v18 }
 0x265   :  { %1887 = vst.msk [vmem:[%s3769_s8 + $0x28] sm:$0xff] %vm1881_vm4, %v1822_v10 }
 0x266   :  { %1888 = vst.msk [vmem:[%s3769_s8 + $0x30] sm:$0xff] %vm1881_vm4, %v1823_v26  ;;  %v1646_v31 = vpop.xlane.xlu1 %1645 }
 0x267   :  { %v1824_v38 = vadd.f32 %v3439_v20, %v1646_v31  ;;  %v1649_v46 = vpop.xlane.xlu0 %1648 }
 0x268   :  { %v1825_v47 = vadd.f32 %v3439_v20, %v1649_v46 }
 0x269   :  { %1889 = vst.msk [vmem:[%s3769_s8 + $0x38] sm:$0xff] %vm1881_vm4, %v1824_v38 }
 0x26a   :  { %1890 = vst.msk [vmem:[%s3769_s8 + $0x40] sm:$0xff] %vm1881_vm4, %v1825_v47  ;;  %v1652_v57 = vpop.xlane.xlu1 %1651 }
 0x26b   :  { %v1826_v6 = vadd.f32 %v3439_v20, %v1652_v57  ;;  %v1655_v7 = vpop.xlane.xlu0 %1654 }
 0x26c   :  { %v1827_v17 = vadd.f32 %v3439_v20, %v1655_v7 }
 0x26d   :  { %1891 = vst.msk [vmem:[%s3769_s8 + $0x48] sm:$0xff] %vm1881_vm4, %v1826_v6 }
 0x26e   :  { %1892 = vst.msk [vmem:[%s3769_s8 + $0x50] sm:$0xff] %vm1881_vm4, %v1827_v17  ;;  %v1658_v23 = vpop.xlane.xlu1 %1657 }
 0x26f   :  { %v1828_v34 = vadd.f32 %v3439_v20, %v1658_v23  ;;  %v1661_v37 = vpop.xlane.xlu0 %1660 }
 0x270   :  { %v1829_v39 = vadd.f32 %v3439_v20, %v1661_v37 }
 0x271   :  { %1893 = vst.msk [vmem:[%s3769_s8 + $0x58] sm:$0xff] %vm1881_vm4, %v1828_v34 }
 0x272   :  { %1894 = vst.msk [vmem:[%s3769_s8 + $0x60] sm:$0xff] %vm1881_vm4, %v1829_v39  ;;  %v1664_v42 = vpop.xlane.xlu1 %1663 }
 0x273   :  { %v1830_v45 = vadd.f32 %v3439_v20, %v1664_v42  ;;  %v1667_v48 = vpop.xlane.xlu0 %1666 }
 0x274   :  { %v1831_v51 = vadd.f32 %v3439_v20, %v1667_v48 }
 0x275   :  { %1895 = vst.msk [vmem:[%s3769_s8 + $0x68] sm:$0xff] %vm1881_vm4, %v1830_v45 }
 0x276   :  { %1896 = vst.msk [vmem:[%s3769_s8 + $0x70] sm:$0xff] %vm1881_vm4, %v1831_v51  ;;  %v1670_v52 = vpop.xlane.xlu1 %1669 }
 0x277   :  { %v1832_v55 = vadd.f32 %v3439_v20, %v1670_v52  ;;  %v1673_v56 = vpop.xlane.xlu0 %1672 }
 0x278   :  { %v1833_v58 = vadd.f32 %v3439_v20, %v1673_v56 }
 0x279   :  { %1897 = vst.msk [vmem:[%s3769_s8 + $0x78] sm:$0xff] %vm1881_vm4, %v1832_v55 }
 0x27a   :  { %1898 = vst.msk [vmem:[%s3769_s8 + $0x80] sm:$0xff] %vm1881_vm4, %v1833_v58  ;;  %v1676_v62 = vpop.xlane.xlu1 %1675 }
 0x27b   :  { %v1834_v63 = vadd.f32 %v3439_v20, %v1676_v62  ;;  %v1679_v0 = vpop.xlane.xlu0 %1678 }
 0x27c   :  { %v1835_v1 = vadd.f32 %v3439_v20, %v1679_v0 }
 0x27d   :  { %1899 = vst.msk [vmem:[%s3769_s8 + $0x88] sm:$0xff] %vm1881_vm4, %v1834_v63 }
 0x27e   :  { %1900 = vst.msk [vmem:[%s3769_s8 + $0x90] sm:$0xff] %vm1881_vm4, %v1835_v1  ;;  %v1682_v5 = vpop.xlane.xlu1 %1681 }
 0x27f   :  { %v1836_v11 = vadd.f32 %v3439_v20, %v1682_v5  ;;  %v1685_v12 = vpop.xlane.xlu0 %1684 }
 0x280   :  { %v1837_v15 = vadd.f32 %v3439_v20, %v1685_v12 }
 0x281   :  { %1901 = vst.msk [vmem:[%s3769_s8 + $0x98] sm:$0xff] %vm1881_vm4, %v1836_v11 }
 0x282   :  { %1902 = vst.msk [vmem:[%s3769_s8 + $0xa0] sm:$0xff] %vm1881_vm4, %v1837_v15  ;;  %v1688_v16 = vpop.xlane.xlu1 %1687 }
 0x283   :  { %v1838_v19 = vadd.f32 %v3439_v20, %v1688_v16  ;;  %v1691_v21 = vpop.xlane.xlu0 %1690 }
 0x284   :  { %v1839_v22 = vadd.f32 %v3439_v20, %v1691_v21 }
 0x285   :  { %1903 = vst.msk [vmem:[%s3769_s8 + $0xa8] sm:$0xff] %vm1881_vm4, %v1838_v19 }
 0x286   :  { %1904 = vst.msk [vmem:[%s3769_s8 + $0xb0] sm:$0xff] %vm1881_vm4, %v1839_v22  ;;  %v1694_v32 = vpop.xlane.xlu1 %1693 }
 0x287   :  { %v1840_v24 = vadd.f32 %v3439_v20, %v1694_v32  ;;  %v1697_v25 = vpop.xlane.xlu0 %1696 }
 0x288   :  { %v1841_v33 = vadd.f32 %v3439_v20, %v1697_v25 }
 0x289   :  { %1905 = vst.msk [vmem:[%s3769_s8 + $0xb8] sm:$0xff] %vm1881_vm4, %v1840_v24 }
 0x28a   :  { %1906 = vst.msk [vmem:[%s3769_s8 + $0xc0] sm:$0xff] %vm1881_vm4, %v1841_v33  ;;  %v1700_v30 = vpop.xlane.xlu1 %1699 }
 0x28b   :  { %v1842_v36 = vadd.f32 %v3439_v20, %v1700_v30  ;;  %v1703_v43 = vpop.xlane.xlu0 %1702 }
 0x28c   :  { %v1843_v49 = vadd.f32 %v3439_v20, %v1703_v43 }
 0x28d   :  { %1907 = vst.msk [vmem:[%s3769_s8 + $0xc8] sm:$0xff] %vm1881_vm4, %v1842_v36 }
 0x28e   :  { %1908 = vst.msk [vmem:[%s3769_s8 + $0xd0] sm:$0xff] %vm1881_vm4, %v1843_v49  ;;  %v1706_v53 = vpop.xlane.xlu1 %1705 }
 0x28f   :  { %v1844_v54 = vadd.f32 %v3439_v20, %v1706_v53  ;;  %v1709_v29 = vpop.xlane.xlu0 %1708 }
 0x290   :  { %v1845_v3 = vadd.f32 %v3439_v20, %v1709_v29 }
 0x291   :  { %1909 = vst.msk [vmem:[%s3769_s8 + $0xd8] sm:$0xff] %vm1881_vm4, %v1844_v54 }
 0x292   :  { %1910 = vst.msk [vmem:[%s3769_s8 + $0xe0] sm:$0xff] %vm1881_vm4, %v1845_v3  ;;  %v1712_v4 = vpop.xlane.xlu1 %1711 }
 0x293   :  { %v1846_v9 = vadd.f32 %v3439_v20, %v1712_v4  ;;  %v1715_v13 = vpop.xlane.xlu0 %1714 }
 0x294   :  { %v1847_v44 = vadd.f32 %v3439_v20, %v1715_v13 }
 0x295   :  { %1911 = vst.msk [vmem:[%s3769_s8 + $0xe8] sm:$0xff] %vm1881_vm4, %v1846_v9 }
 0x296   :  { %1912 = vst.msk [vmem:[%s3769_s8 + $0xf0] sm:$0xff] %vm1881_vm4, %v1847_v44  ;;  %v1718_v14 = vpop.xlane.xlu1 %1717 }
 0x297   :  { %v1848_v27 = vadd.f32 %v3439_v20, %v1718_v14  ;;  %v1721_v28 = vpop.xlane.xlu0 %1720 }
 0x298   :  { %v1849_v60 = vadd.f32 %v3439_v20, %v1721_v28 }
 0x299   :  { %1913 = vst.msk [vmem:[%s3769_s8 + $0xf8] sm:$0xff] %vm1881_vm4, %v1848_v27 }
 0x29a   :  { %1914 = vst.msk [vmem:[%s3769_s8 + $0x100] sm:$0xff] %vm1881_vm4, %v1849_v60  ;;  %v1724_v35 = vpop.xlane.xlu1 %1723 }
 0x29b   :  { %v1850_v40 = vadd.f32 %v3439_v20, %v1724_v35  ;;  %v1727_v41 = vpop.xlane.xlu0 %1726 }
 0x29c   :  { %v1851_v50 = vadd.f32 %v3439_v20, %v1727_v41 }
 0x29d   :  { %1915 = vst.msk [vmem:[%s3769_s8 + $0x108] sm:$0xff] %vm1881_vm4, %v1850_v40 }
 0x29e   :  { %1916 = vst.msk [vmem:[%s3769_s8 + $0x110] sm:$0xff] %vm1881_vm4, %v1851_v50  ;;  %v1730_v59 = vpop.xlane.xlu1 %1729 }
 0x29f   :  { %v1852_v61 = vadd.f32 %v3439_v20, %v1730_v59  ;;  %v1733_v2 = vpop.xlane.xlu0 %1732 }
 0x2a0   :  { %v1853_v8 = vadd.f32 %v3439_v20, %v1733_v2 }
 0x2a1   :  { %1917 = vst.msk [vmem:[%s3769_s8 + $0x118] sm:$0xff] %vm1881_vm4, %v1852_v61 }
 0x2a2   :  { %1918 = vst.msk [vmem:[%s3769_s8 + $0x120] sm:$0xff] %vm1881_vm4, %v1853_v8  ;;  %v1736_v10 = vpop.xlane.xlu1 %1735 }
 0x2a3   :  { %v1854_v18 = vadd.f32 %v3439_v20, %v1736_v10  ;;  %v1739_v26 = vpop.xlane.xlu0 %1738 }
 0x2a4   :  { %v1855_v31 = vadd.f32 %v3439_v20, %v1739_v26 }
 0x2a5   :  { %1919 = vst.msk [vmem:[%s3769_s8 + $0x128] sm:$0xff] %vm1881_vm4, %v1854_v18 }
 0x2a6   :  { %1920 = vst.msk [vmem:[%s3769_s8 + $0x130] sm:$0xff] %vm1881_vm4, %v1855_v31  ;;  %v1742_v38 = vpop.xlane.xlu1 %1741 }
 0x2a7   :  { %v1856_v46 = vadd.f32 %v3439_v20, %v1742_v38  ;;  %v1745_v47 = vpop.xlane.xlu0 %1744 }
 0x2a8   :  { %v1857_v57 = vadd.f32 %v3439_v20, %v1745_v47 }
 0x2a9   :  { %1921 = vst.msk [vmem:[%s3769_s8 + $0x138] sm:$0xff] %vm1881_vm4, %v1856_v46 }
 0x2aa   :  { %1922 = vst.msk [vmem:[%s3769_s8 + $0x140] sm:$0xff] %vm1881_vm4, %v1857_v57  ;;  %v1748_v6 = vpop.xlane.xlu1 %1747 }
 0x2ab   :  { %v1858_v7 = vadd.f32 %v3439_v20, %v1748_v6  ;;  %v1751_v17 = vpop.xlane.xlu0 %1750 }
 0x2ac   :  { %v1859_v23 = vadd.f32 %v3439_v20, %v1751_v17 }
 0x2ad   :  { %1923 = vst.msk [vmem:[%s3769_s8 + $0x148] sm:$0xff] %vm1881_vm4, %v1858_v7 }
 0x2ae   :  { %1924 = vst.msk [vmem:[%s3769_s8 + $0x150] sm:$0xff] %vm1881_vm4, %v1859_v23  ;;  %v1754_v34 = vpop.xlane.xlu1 %1753 }
 0x2af   :  { %v1860_v37 = vadd.f32 %v3439_v20, %v1754_v34  ;;  %v1757_v39 = vpop.xlane.xlu0 %1756 }
 0x2b0   :  { %v1861_v42 = vadd.f32 %v3439_v20, %v1757_v39 }
 0x2b1   :  { %1925 = vst.msk [vmem:[%s3769_s8 + $0x158] sm:$0xff] %vm1881_vm4, %v1860_v37 }
 0x2b2   :  { %1926 = vst.msk [vmem:[%s3769_s8 + $0x160] sm:$0xff] %vm1881_vm4, %v1861_v42  ;;  %v1760_v45 = vpop.xlane.xlu1 %1759 }
 0x2b3   :  { %v1862_v48 = vadd.f32 %v3439_v20, %v1760_v45  ;;  %v1763_v51 = vpop.xlane.xlu0 %1762 }
 0x2b4   :  { %v1863_v52 = vadd.f32 %v3439_v20, %v1763_v51 }
 0x2b5   :  { %1927 = vst.msk [vmem:[%s3769_s8 + $0x168] sm:$0xff] %vm1881_vm4, %v1862_v48 }
 0x2b6   :  { %1928 = vst.msk [vmem:[%s3769_s8 + $0x170] sm:$0xff] %vm1881_vm4, %v1863_v52  ;;  %v1766_v55 = vpop.xlane.xlu1 %1765 }
 0x2b7   :  { %v1864_v56 = vadd.f32 %v3439_v20, %v1766_v55  ;;  %v1769_v58 = vpop.xlane.xlu0 %1768 }
 0x2b8   :  { %v1865_v62 = vadd.f32 %v3439_v20, %v1769_v58 }
 0x2b9   :  { %1929 = vst.msk [vmem:[%s3769_s8 + $0x178] sm:$0xff] %vm1881_vm4, %v1864_v56 }
 0x2ba   :  { %1930 = vst.msk [vmem:[%s3769_s8 + $0x180] sm:$0xff] %vm1881_vm4, %v1865_v62  ;;  %v1772_v63 = vpop.xlane.xlu1 %1771 }
 0x2bb   :  { %v1866_v0 = vadd.f32 %v3439_v20, %v1772_v63  ;;  %v1775_v1 = vpop.xlane.xlu0 %1774 }
 0x2bc   :  { %v1867_v5 = vadd.f32 %v3439_v20, %v1775_v1 }
 0x2bd   :  { %1931 = vst.msk [vmem:[%s3769_s8 + $0x188] sm:$0xff] %vm1881_vm4, %v1866_v0 }
 0x2be   :  { %1932 = vst.msk [vmem:[%s3769_s8 + $0x190] sm:$0xff] %vm1881_vm4, %v1867_v5  ;;  %v1778_v11 = vpop.xlane.xlu1 %1777 }
 0x2bf   :  { %v1868_v12 = vadd.f32 %v3439_v20, %v1778_v11  ;;  %v1781_v15 = vpop.xlane.xlu0 %1780 }
 0x2c0   :  { %v1869_v16 = vadd.f32 %v3439_v20, %v1781_v15 }
 0x2c1   :  { %1933 = vst.msk [vmem:[%s3769_s8 + $0x198] sm:$0xff] %vm1881_vm4, %v1868_v12 }
 0x2c2   :  { %1934 = vst.msk [vmem:[%s3769_s8 + $0x1a0] sm:$0xff] %vm1881_vm4, %v1869_v16  ;;  %v1784_v19 = vpop.xlane.xlu1 %1783 }
 0x2c3   :  { %v1870_v21 = vadd.f32 %v3439_v20, %v1784_v19  ;;  %v1787_v22 = vpop.xlane.xlu0 %1786 }
 0x2c4   :  { %v1871_v32 = vadd.f32 %v3439_v20, %v1787_v22 }
 0x2c5   :  { %1935 = vst.msk [vmem:[%s3769_s8 + $0x1a8] sm:$0xff] %vm1881_vm4, %v1870_v21 }
 0x2c6   :  { %1936 = vst.msk [vmem:[%s3769_s8 + $0x1b0] sm:$0xff] %vm1881_vm4, %v1871_v32  ;;  %v1790_v24 = vpop.xlane.xlu1 %1789 }
 0x2c7   :  { %v1872_v25 = vadd.f32 %v3439_v20, %v1790_v24  ;;  %v1793_v33 = vpop.xlane.xlu0 %1792 }
 0x2c8   :  { %v1873_v30 = vadd.f32 %v3439_v20, %v1793_v33 }
 0x2c9   :  { %1937 = vst.msk [vmem:[%s3769_s8 + $0x1b8] sm:$0xff] %vm1881_vm4, %v1872_v25 }
 0x2ca   :  { %1938 = vst.msk [vmem:[%s3769_s8 + $0x1c0] sm:$0xff] %vm1881_vm4, %v1873_v30  ;;  %v1796_v36 = vpop.xlane.xlu1 %1795 }
 0x2cb   :  { %v1874_v43 = vadd.f32 %v3439_v20, %v1796_v36  ;;  %v1799_v49 = vpop.xlane.xlu0 %1798 }
 0x2cc   :  { %v1875_v53 = vadd.f32 %v3439_v20, %v1799_v49 }
 0x2cd   :  { %1939 = vst.msk [vmem:[%s3769_s8 + $0x1c8] sm:$0xff] %vm1881_vm4, %v1874_v43 }
 0x2ce   :  { %1940 = vst.msk [vmem:[%s3769_s8 + $0x1d0] sm:$0xff] %vm1881_vm4, %v1875_v53  ;;  %v1802_v54 = vpop.xlane.xlu1 %1801 }
 0x2cf   :  { %v1876_v29 = vadd.f32 %v3439_v20, %v1802_v54  ;;  %v1805_v3 = vpop.xlane.xlu0 %1804 }
 0x2d0   :  { %v1877_v4 = vadd.f32 %v3439_v20, %v1805_v3 }
 0x2d1   :  { %1941 = vst.msk [vmem:[%s3769_s8 + $0x1d8] sm:$0xff] %vm1881_vm4, %v1876_v29 }
 0x2d2   :  { %1942 = vst.msk [vmem:[%s3769_s8 + $0x1e0] sm:$0xff] %vm1881_vm4, %v1877_v4  ;;  %v1808_v9 = vpop.xlane.xlu1 %1807 }
 0x2d3   :  { %v1878_v13 = vadd.f32 %v3439_v20, %v1808_v9  ;;  %v1811_v44 = vpop.xlane.xlu0 %1810 }
 0x2d4   :  { %v1879_v14 = vadd.f32 %v3439_v20, %v1811_v44 }
 0x2d5   :  { %1943 = vst.msk [vmem:[%s3769_s8 + $0x1e8] sm:$0xff] %vm1881_vm4, %v1878_v13 }
 0x2d6   :  { %1944 = vst.msk [vmem:[%s3769_s8 + $0x1f0] sm:$0xff] %vm1881_vm4, %v1879_v14  ;;  %v1814_v27 = vpop.xlane.xlu1 %1813 }
 0x2d7   :  { %v1880_v28 = vadd.f32 %v3439_v20, %v1814_v27 }
 0x2d9   :  { %1945 = vst.msk [vmem:[%s3769_s8 + $0x1f8] sm:$0xff] %vm1881_vm4, %v1880_v28 }

</bundles_post_ra>
